<compile_context>
chip_gen: v5e
topology: v5e:2x2
jax: 0.10.0
libtpu: 0.0.40
codegen_flags: <defaults>
</compile_context>

<pallas_src>
import functools

import jax
import jax.numpy as jnp
import numpy as np
from jax.experimental import pallas as pl
from jax.experimental.pallas import tpu as pltpu

_TAPS = tuple((dh, dw) for dh in (-1, 0, 1) for dw in (-1, 0, 1))  # 3x3, row-major
_NEG_SLOPE = 0.01   # nn.LeakyReLU() default
_OFF = 128          # lane-aligned payload offset inside the extended buffers
_MARGIN = 128       # right zero margin (>= largest positive shift 2*W + 2)


def _zero_margins(ref, M):
    """Zero only the left/right margins; the payload is always fully written."""
    c = ref.shape[0]
    ref[:, 0:_OFF] = jnp.zeros((c, _OFF), ref.dtype)
    ref[:, _OFF + M:_OFF + M + _MARGIN] = jnp.zeros((c, _MARGIN), ref.dtype)


# -----------------------------------------------------------------------------
# Fused kernel: pad + conv1 + BN + LeakyReLU + pool1 + conv2 + BN + LeakyReLU
#               + pool2 + CHW-flatten + Linear, single invocation, no grid.
# -----------------------------------------------------------------------------
def _fused_cnn_kernel(x_ref, w1_ref, m1_ref, a1_ref, b1_ref,
                      w2_ref, m2_ref, a2_ref, b2_ref,
                      wfc_ref, fcb_ref, o_ref,
                      ex_ref, ez1_ref, eu1_ref, ez2_ref, p1_ref, p2_ref,
                      *, N, H, W, C1, C2, n_cls):
    M = N * H * W          # flattened (n, h, w) positions -> lane dimension

    # ---- stage 0: input into a zero-margined extended buffer (replaces jnp.pad)
    _zero_margins(ex_ref, M)
    ex_ref[:, _OFF:_OFF + M] = x_ref[...]

    # ---- conv block 1: 9 shifted+masked taps -> (9, M) im2col -> ONE MXU matmul
    for t, (dh, dw) in enumerate(_TAPS):
        s = dh * W + dw
        p1_ref[t:t + 1, :] = ex_ref[:, _OFF + s:_OFF + s + M] * m1_ref[t:t + 1, :]
    z1 = jnp.dot(w1_ref[...], p1_ref[...], preferred_element_type=jnp.float32)
    z1 = z1 * a1_ref[...] + b1_ref[...]          # BN (inference) + conv bias folded
    z1 = jnp.maximum(z1, _NEG_SLOPE * z1)        # LeakyReLU(0.01)

    # ---- maxpool 1 (2x2, stride 2), kept in the un-compacted lane space:
    #      pooled value for (h//2, w//2) sits at the even (h, w) lane position.
    _zero_margins(ez1_ref, M)
    ez1_ref[:, _OFF:_OFF + M] = z1
    u1 = z1
    for s in (1, W, W + 1):
        u1 = jnp.maximum(u1, ez1_ref[:, _OFF + s:_OFF + s + M])

    _zero_margins(eu1_ref, M)
    eu1_ref[:, _OFF:_OFF + M] = u1

    # ---- conv block 2: neighbours on the pooled grid are stride-2 lane shifts
    for t, (dh, dw) in enumerate(_TAPS):
        s = 2 * (dh * W + dw)
        p2_ref[C1 * t:C1 * t + C1, :] = (
            eu1_ref[:, _OFF + s:_OFF + s + M] * m2_ref[t:t + 1, :])
    z2 = jnp.dot(w2_ref[...], p2_ref[...], preferred_element_type=jnp.float32)
    z2 = z2 * a2_ref[...] + b2_ref[...]
    z2 = jnp.maximum(z2, _NEG_SLOPE * z2)

    # ---- maxpool 2 (2x2 on the pooled grid == stride-4 positions here)
    _zero_margins(ez2_ref, M)
    ez2_ref[:, _OFF:_OFF + M] = z2
    u2 = z2
    for s in (2, 2 * W, 2 * W + 2):
        u2 = jnp.maximum(u2, ez2_ref[:, _OFF + s:_OFF + s + M])
    # u2[c, m] at (h % 4 == 0, w % 4 == 0) holds the final pooled feature map.

    # ---- Flatten (torch CHW order) + Dropout(eval: identity) + Linear.
    # The "pick every 4th pixel" compaction, the CHW-flatten ordering and the
    # image selection are folded into dense (N*n_cls, C2, M) weight planes
    # (zero at unused lanes), so each logit is one elementwise multiply over
    # the resident (C2, M) activations plus a lane+sublane reduction — no MXU,
    # no zero-padded skinny-RHS loads.
    # TODO(synk): training-mode (stochastic) dropout not implemented.
    for n in range(N):
        for k in range(n_cls):
            y = u2 * wfc_ref[n * n_cls + k]                       # (C2, M)
            r = jnp.sum(jnp.sum(y, axis=1, keepdims=True), axis=0, keepdims=True)
            o_ref[n:n + 1, k:k + 1] = (r + fcb_ref[0:1, k:k + 1]).astype(o_ref.dtype)


def _fused_forward(x_flat, kp, *, N, H, W, C1, C2, n_cls):
    M = N * H * W
    ext = _OFF + M + _MARGIN
    kern = functools.partial(_fused_cnn_kernel,
                             N=N, H=H, W=W, C1=C1, C2=C2, n_cls=n_cls)
    return pl.pallas_call(
        kern,
        out_shape=jax.ShapeDtypeStruct((N, n_cls), jnp.float32),
        scratch_shapes=[
            pltpu.VMEM((1, ext), jnp.float32),        # padded input
            pltpu.VMEM((C1, ext), jnp.float32),       # conv1 activations (for pool1)
            pltpu.VMEM((C1, ext), jnp.float32),       # pool1 output (for conv2 taps)
            pltpu.VMEM((C2, ext), jnp.float32),       # conv2 activations (for pool2)
            pltpu.VMEM((9, M), jnp.float32),          # im2col block 1
            pltpu.VMEM((9 * C1, M), jnp.float32),     # im2col block 2
        ],
    )(x_flat, kp["w1"], kp["m1"], kp["a1"], kp["b1"],
      kp["w2"], kp["m2"], kp["a2"], kp["b2"], kp["wfc"], kp["fcb"])


# -----------------------------------------------------------------------------
# Parameter init (mirrors the PyTorch module's __init__, PyTorch-native layouts)
# -----------------------------------------------------------------------------
def xavier_uniform(key, shape, fan_in, fan_out):
    bound = (6.0 / (fan_in + fan_out)) ** 0.5
    return jax.random.uniform(key, shape, jnp.float32, -bound, bound)


def init_cnn_params(key, *, layer_number=2, input_size=(16, 16), inplanes=4, fc_out=2):
    channels = [inplanes * 2 ** i for i in range(layer_number)]   # [4, 8]
    params = {"conv": []}
    prev_c = 1
    for c in channels:
        key, kw_, kb_ = jax.random.split(key, 3)
        fan_in, fan_out = prev_c * 9, c * 9
        w = xavier_uniform(kw_, (c, prev_c, 3, 3), fan_in, fan_out)    # OIHW (torch)
        bb = 1.0 / (fan_in ** 0.5)
        b = jax.random.uniform(kb_, (c,), jnp.float32, -bb, bb)        # Conv2d default bias
        params["conv"].append((w, b))
        prev_c = c
    fc_in = channels[-1] * (input_size[0] // 2 ** layer_number) * (input_size[1] // 2 ** layer_number)
    key, kfc = jax.random.split(key)
    params["fc_w"] = xavier_uniform(kfc, (fc_out, fc_in), fc_in, fc_out)   # torch (out, in)
    params["fc_b"] = jnp.full((fc_out,), 0.01, jnp.float32)               # init_weights bias
    return params


def prepare_kernel_params(params, *, batch, H, W, eps=1e-5):
    """Pack PyTorch-layout parameters into the layouts the fused kernel consumes."""
    assert H % 4 == 0 and W % 4 == 0, "kernel assumes even pooling at both stages"
    (w1, b1), (w2, b2) = params["conv"]
    C1, C2 = int(w1.shape[0]), int(w2.shape[0])
    n_cls = int(params["fc_w"].shape[0])
    M = batch * H * W

    # BatchNorm2d inference (running_mean=0, running_var=1, gamma=1, beta=0),
    # folded together with the conv bias into one per-channel affine.
    scale = 1.0 / np.sqrt(1.0 + eps)
    a1 = jnp.full((C1, 1), scale, jnp.float32)
    a2 = jnp.full((C2, 1), scale, jnp.float32)
    b1f = (b1 * scale).reshape(C1, 1).astype(jnp.float32)
    b2f = (b2 * scale).reshape(C2, 1).astype(jnp.float32)

    # im2col weight matrices; columns ordered (tap, in_channel) to match the kernel.
    w1_mat = w1.reshape(C1, 9).astype(jnp.float32)                       # Cin == 1
    w2_mat = jnp.transpose(w2, (0, 2, 3, 1)).reshape(C2, 9 * C1).astype(jnp.float32)

    # Per-tap validity masks (the convs' zero padding) on the flattened (n,h,w) index.
    m = np.arange(M)
    h, w = (m // W) % H, m % W
    hp, wp = h // 2, w // 2
    H2, W2 = H // 2, W // 2
    m1 = np.stack([((h + dh >= 0) & (h + dh < H) & (w + dw >= 0) & (w + dw < W))
                   for dh, dw in _TAPS]).astype(np.float32)
    m2 = np.stack([((hp + dh >= 0) & (hp + dh < H2) & (wp + dw >= 0) & (wp + dw < W2))
                   for dh, dw in _TAPS]).astype(np.float32)

    # FC weight expanded onto the un-compacted lane space as dense per-logit
    # planes: wfc[n*n_cls+k, c, m] is nonzero only for m inside image n at the
    # positions surviving both 2x2 max-pools (h%4==0, w%4==0), carrying the
    # torch CHW-flatten ordering.
    Hf, Wf = H // 4, W // 4
    fc_np = np.asarray(params["fc_w"], np.float32).reshape(n_cls, C2, Hf, Wf)
    wfc = np.zeros((batch * n_cls, C2, M), np.float32)
    for n in range(batch):
        for k in range(n_cls):
            j = n * n_cls + k
            for hf in range(Hf):
                for wf in range(Wf):
                    wfc[j, :, n * H * W + (4 * hf) * W + 4 * wf] = fc_np[k, :, hf, wf]

    return {
        "w1": w1_mat, "m1": jnp.asarray(m1), "a1": a1, "b1": b1f,
        "w2": w2_mat, "m2": jnp.asarray(m2), "a2": a2, "b2": b2f,
        "wfc": jnp.asarray(wfc), "fcb": params["fc_b"].reshape(1, n_cls),
    }


# -----------------------------------------------------------------------------
# Forward pass (matches CNNModel.forward, eval mode)
# -----------------------------------------------------------------------------
@jax.jit
def cnn_forward(x_nchw, kp):
    N, _, H, W = x_nchw.shape
    C1 = kp["w1"].shape[0]
    C2 = kp["w2"].shape[0]
    n_cls = kp["fcb"].shape[-1]
    # Cin == 1: flatten (n, h, w) onto the lane dimension (no transposes, no pad glue).
    x_flat = x_nchw.reshape(1, N * H * W)
    return _fused_forward(x_flat, kp, N=N, H=H, W=W, C1=C1, C2=C2, n_cls=n_cls)


if __name__ == "__main__":
    key = jax.random.PRNGKey(0)
    key_x, key_p = jax.random.split(key)

    # CNNModel(layer_number=2, input_size=(16, 16), inplanes=4):
    #   conv channels [4, 8], flatten size 8*4*4 = 128, fc: 128 -> 2.
    N, H, W = 2, 16, 16
    x = jax.random.normal(key_x, (N, 1, H, W), jnp.float32)      # NCHW, in-channels = 1
    params = init_cnn_params(key_p, layer_number=2, input_size=(H, W), inplanes=4, fc_out=2)
    kparams = prepare_kernel_params(params, batch=N, H=H, W=W)

    out = cnn_forward(x, kparams)
    out = jax.block_until_ready(out)
    assert out.shape == (N, 2), out.shape
    assert bool(jnp.all(jnp.isfinite(out)))
    print("KERNEL_OK")
</pallas_src>

<mosaic_0001>
module attributes {stable_mosaic.version = 11 : i64} {
  func.func @_fused_cnn_kernel(%arg0: memref<1x512xf32, #tpu.memory_space<vmem>>, %arg1: memref<4x9xf32, #tpu.memory_space<vmem>>, %arg2: memref<9x512xf32, #tpu.memory_space<vmem>>, %arg3: memref<4x1xf32, #tpu.memory_space<vmem>>, %arg4: memref<4x1xf32, #tpu.memory_space<vmem>>, %arg5: memref<8x36xf32, #tpu.memory_space<vmem>>, %arg6: memref<9x512xf32, #tpu.memory_space<vmem>>, %arg7: memref<8x1xf32, #tpu.memory_space<vmem>>, %arg8: memref<8x1xf32, #tpu.memory_space<vmem>>, %arg9: memref<4x8x512xf32, #tpu.memory_space<vmem>>, %arg10: memref<1x2xf32, #tpu.memory_space<vmem>>, %arg11: memref<2x2xf32, #tpu.memory_space<vmem>>, %arg12: memref<1x768xf32, #tpu.memory_space<vmem>>, %arg13: memref<4x768xf32, #tpu.memory_space<vmem>>, %arg14: memref<4x768xf32, #tpu.memory_space<vmem>>, %arg15: memref<8x768xf32, #tpu.memory_space<vmem>>, %arg16: memref<9x512xf32, #tpu.memory_space<vmem>>, %arg17: memref<36x512xf32, #tpu.memory_space<vmem>>) attributes {dimension_semantics = [], scalar_prefetch = 0 : i64, scratch_operands = 6 : i64, tpu.core_type = #tpu.core_type<tc>} {
    %cst = arith.constant 0.000000e+00 : f32
    %0 = vector.broadcast %cst : f32 to vector<1x128xf32>
    %c0 = arith.constant 0 : index
    %c0_0 = arith.constant 0 : index
    %1 = vector.load %arg12[%c0, %c0_0] : memref<1x768xf32, #tpu.memory_space<vmem>>, vector<1x128xf32>
    tpu.vector_store %arg12[%c0, %c0_0], %0 {strides = array<i32>} : memref<1x768xf32, #tpu.memory_space<vmem>>, vector<1x128xf32>,
    %cst_1 = arith.constant 0.000000e+00 : f32
    %2 = vector.broadcast %cst_1 : f32 to vector<1x128xf32>
    %c0_2 = arith.constant 0 : index
    %c640 = arith.constant 640 : index
    %3 = vector.load %arg12[%c0_2, %c640] : memref<1x768xf32, #tpu.memory_space<vmem>>, vector<1x128xf32>
    tpu.vector_store %arg12[%c0_2, %c640], %2 {strides = array<i32>} : memref<1x768xf32, #tpu.memory_space<vmem>>, vector<1x128xf32>,
    %c0_3 = arith.constant 0 : index
    %c0_4 = arith.constant 0 : index
    %4 = vector.load %arg0[%c0_3, %c0_4] : memref<1x512xf32, #tpu.memory_space<vmem>>, vector<1x512xf32>
    %c0_5 = arith.constant 0 : index
    %c128 = arith.constant 128 : index
    %5 = vector.load %arg12[%c0_5, %c128] : memref<1x768xf32, #tpu.memory_space<vmem>>, vector<1x512xf32>
    tpu.vector_store %arg12[%c0_5, %c128], %4 {strides = array<i32>} : memref<1x768xf32, #tpu.memory_space<vmem>>, vector<1x512xf32>,
    %c0_6 = arith.constant 0 : index
    %c111 = arith.constant 111 : index
    %6 = vector.load %arg12[%c0_6, %c111] : memref<1x768xf32, #tpu.memory_space<vmem>>, vector<1x512xf32>
    %c0_7 = arith.constant 0 : index
    %c0_8 = arith.constant 0 : index
    %7 = vector.load %arg2[%c0_7, %c0_8] : memref<9x512xf32, #tpu.memory_space<vmem>>, vector<1x512xf32>
    %8 = arith.mulf %6, %7 : vector<1x512xf32>
    %c0_9 = arith.constant 0 : index
    %c0_10 = arith.constant 0 : index
    %9 = vector.load %arg16[%c0_9, %c0_10] : memref<9x512xf32, #tpu.memory_space<vmem>>, vector<1x512xf32>
    tpu.vector_store %arg16[%c0_9, %c0_10], %8 {strides = array<i32>} : memref<9x512xf32, #tpu.memory_space<vmem>>, vector<1x512xf32>,
    %c0_11 = arith.constant 0 : index
    %c112 = arith.constant 112 : index
    %10 = vector.load %arg12[%c0_11, %c112] : memref<1x768xf32, #tpu.memory_space<vmem>>, vector<1x512xf32>
    %c1 = arith.constant 1 : index
    %c0_12 = arith.constant 0 : index
    %11 = vector.load %arg2[%c1, %c0_12] : memref<9x512xf32, #tpu.memory_space<vmem>>, vector<1x512xf32>
    %12 = arith.mulf %10, %11 : vector<1x512xf32>
    %c1_13 = arith.constant 1 : index
    %c0_14 = arith.constant 0 : index
    %13 = vector.load %arg16[%c1_13, %c0_14] : memref<9x512xf32, #tpu.memory_space<vmem>>, vector<1x512xf32>
    tpu.vector_store %arg16[%c1_13, %c0_14], %12 {strides = array<i32>} : memref<9x512xf32, #tpu.memory_space<vmem>>, vector<1x512xf32>,
    %c0_15 = arith.constant 0 : index
    %c113 = arith.constant 113 : index
    %14 = vector.load %arg12[%c0_15, %c113] : memref<1x768xf32, #tpu.memory_space<vmem>>, vector<1x512xf32>
    %c2 = arith.constant 2 : index
    %c0_16 = arith.constant 0 : index
    %15 = vector.load %arg2[%c2, %c0_16] : memref<9x512xf32, #tpu.memory_space<vmem>>, vector<1x512xf32>
    %16 = arith.mulf %14, %15 : vector<1x512xf32>
    %c2_17 = arith.constant 2 : index
    %c0_18 = arith.constant 0 : index
    %17 = vector.load %arg16[%c2_17, %c0_18] : memref<9x512xf32, #tpu.memory_space<vmem>>, vector<1x512xf32>
    tpu.vector_store %arg16[%c2_17, %c0_18], %16 {strides = array<i32>} : memref<9x512xf32, #tpu.memory_space<vmem>>, vector<1x512xf32>,
    %c0_19 = arith.constant 0 : index
    %c127 = arith.constant 127 : index
    %18 = vector.load %arg12[%c0_19, %c127] : memref<1x768xf32, #tpu.memory_space<vmem>>, vector<1x512xf32>
    %c3 = arith.constant 3 : index
    %c0_20 = arith.constant 0 : index
    %19 = vector.load %arg2[%c3, %c0_20] : memref<9x512xf32, #tpu.memory_space<vmem>>, vector<1x512xf32>
    %20 = arith.mulf %18, %19 : vector<1x512xf32>
    %c3_21 = arith.constant 3 : index
    %c0_22 = arith.constant 0 : index
    %21 = vector.load %arg16[%c3_21, %c0_22] : memref<9x512xf32, #tpu.memory_space<vmem>>, vector<1x512xf32>
    tpu.vector_store %arg16[%c3_21, %c0_22], %20 {strides = array<i32>} : memref<9x512xf32, #tpu.memory_space<vmem>>, vector<1x512xf32>,
    %c0_23 = arith.constant 0 : index
    %c128_24 = arith.constant 128 : index
    %22 = vector.load %arg12[%c0_23, %c128_24] : memref<1x768xf32, #tpu.memory_space<vmem>>, vector<1x512xf32>
    %c4 = arith.constant 4 : index
    %c0_25 = arith.constant 0 : index
    %23 = vector.load %arg2[%c4, %c0_25] : memref<9x512xf32, #tpu.memory_space<vmem>>, vector<1x512xf32>
    %24 = arith.mulf %22, %23 : vector<1x512xf32>
    %c4_26 = arith.constant 4 : index
    %c0_27 = arith.constant 0 : index
    %25 = vector.load %arg16[%c4_26, %c0_27] : memref<9x512xf32, #tpu.memory_space<vmem>>, vector<1x512xf32>
    tpu.vector_store %arg16[%c4_26, %c0_27], %24 {strides = array<i32>} : memref<9x512xf32, #tpu.memory_space<vmem>>, vector<1x512xf32>,
    %c0_28 = arith.constant 0 : index
    %c129 = arith.constant 129 : index
    %26 = vector.load %arg12[%c0_28, %c129] : memref<1x768xf32, #tpu.memory_space<vmem>>, vector<1x512xf32>
    %c5 = arith.constant 5 : index
    %c0_29 = arith.constant 0 : index
    %27 = vector.load %arg2[%c5, %c0_29] : memref<9x512xf32, #tpu.memory_space<vmem>>, vector<1x512xf32>
    %28 = arith.mulf %26, %27 : vector<1x512xf32>
    %c5_30 = arith.constant 5 : index
    %c0_31 = arith.constant 0 : index
    %29 = vector.load %arg16[%c5_30, %c0_31] : memref<9x512xf32, #tpu.memory_space<vmem>>, vector<1x512xf32>
    tpu.vector_store %arg16[%c5_30, %c0_31], %28 {strides = array<i32>} : memref<9x512xf32, #tpu.memory_space<vmem>>, vector<1x512xf32>,
    %c0_32 = arith.constant 0 : index
    %c143 = arith.constant 143 : index
    %30 = vector.load %arg12[%c0_32, %c143] : memref<1x768xf32, #tpu.memory_space<vmem>>, vector<1x512xf32>
    %c6 = arith.constant 6 : index
    %c0_33 = arith.constant 0 : index
    %31 = vector.load %arg2[%c6, %c0_33] : memref<9x512xf32, #tpu.memory_space<vmem>>, vector<1x512xf32>
    %32 = arith.mulf %30, %31 : vector<1x512xf32>
    %c6_34 = arith.constant 6 : index
    %c0_35 = arith.constant 0 : index
    %33 = vector.load %arg16[%c6_34, %c0_35] : memref<9x512xf32, #tpu.memory_space<vmem>>, vector<1x512xf32>
    tpu.vector_store %arg16[%c6_34, %c0_35], %32 {strides = array<i32>} : memref<9x512xf32, #tpu.memory_space<vmem>>, vector<1x512xf32>,
    %c0_36 = arith.constant 0 : index
    %c144 = arith.constant 144 : index
    %34 = vector.load %arg12[%c0_36, %c144] : memref<1x768xf32, #tpu.memory_space<vmem>>, vector<1x512xf32>
    %c7 = arith.constant 7 : index
    %c0_37 = arith.constant 0 : index
    %35 = vector.load %arg2[%c7, %c0_37] : memref<9x512xf32, #tpu.memory_space<vmem>>, vector<1x512xf32>
    %36 = arith.mulf %34, %35 : vector<1x512xf32>
    %c7_38 = arith.constant 7 : index
    %c0_39 = arith.constant 0 : index
    %37 = vector.load %arg16[%c7_38, %c0_39] : memref<9x512xf32, #tpu.memory_space<vmem>>, vector<1x512xf32>
    tpu.vector_store %arg16[%c7_38, %c0_39], %36 {strides = array<i32>} : memref<9x512xf32, #tpu.memory_space<vmem>>, vector<1x512xf32>,
    %c0_40 = arith.constant 0 : index
    %c145 = arith.constant 145 : index
    %38 = vector.load %arg12[%c0_40, %c145] : memref<1x768xf32, #tpu.memory_space<vmem>>, vector<1x512xf32>
    %c8 = arith.constant 8 : index
    %c0_41 = arith.constant 0 : index
    %39 = vector.load %arg2[%c8, %c0_41] : memref<9x512xf32, #tpu.memory_space<vmem>>, vector<1x512xf32>
    %40 = arith.mulf %38, %39 : vector<1x512xf32>
    %c8_42 = arith.constant 8 : index
    %c0_43 = arith.constant 0 : index
    %41 = vector.load %arg16[%c8_42, %c0_43] : memref<9x512xf32, #tpu.memory_space<vmem>>, vector<1x512xf32>
    tpu.vector_store %arg16[%c8_42, %c0_43], %40 {strides = array<i32>} : memref<9x512xf32, #tpu.memory_space<vmem>>, vector<1x512xf32>,
    %c0_44 = arith.constant 0 : index
    %c0_45 = arith.constant 0 : index
    %42 = vector.load %arg1[%c0_44, %c0_45] : memref<4x9xf32, #tpu.memory_space<vmem>>, vector<4x9xf32>
    %c0_46 = arith.constant 0 : index
    %c0_47 = arith.constant 0 : index
    %43 = vector.load %arg16[%c0_46, %c0_47] : memref<9x512xf32, #tpu.memory_space<vmem>>, vector<9x512xf32>
    %cst_48 = arith.constant dense<0.000000e+00> : vector<4x512xf32>
    %44 = tpu.matmul %42, %43, %cst_48 {dimension_numbers = #tpu.dot_dimension_numbers<[1], [0], [0], [1], [0, 0, 1, 1], [], []>} : vector<4x9xf32>, vector<9x512xf32>, vector<4x512xf32> -> vector<4x512xf32>
    %c0_49 = arith.constant 0 : index
    %c0_50 = arith.constant 0 : index
    %45 = vector.load %arg3[%c0_49, %c0_50] : memref<4x1xf32, #tpu.memory_space<vmem>>, vector<4x1xf32>
    %46 = vector.broadcast %45 : vector<4x1xf32> to vector<4x512xf32>
    %47 = arith.mulf %44, %46 : vector<4x512xf32>
    %c0_51 = arith.constant 0 : index
    %c0_52 = arith.constant 0 : index
    %48 = vector.load %arg4[%c0_51, %c0_52] : memref<4x1xf32, #tpu.memory_space<vmem>>, vector<4x1xf32>
    %49 = vector.broadcast %48 : vector<4x1xf32> to vector<4x512xf32>
    %50 = arith.addf %47, %49 : vector<4x512xf32>
    %cst_53 = arith.constant 0.00999999977 : f32
    %51 = vector.broadcast %cst_53 : f32 to vector<4x512xf32>
    %52 = arith.mulf %51, %50 : vector<4x512xf32>
    %53 = arith.maximumf %50, %52 : vector<4x512xf32>
    %cst_54 = arith.constant 0.000000e+00 : f32
    %54 = vector.broadcast %cst_54 : f32 to vector<4x128xf32>
    %c0_55 = arith.constant 0 : index
    %c0_56 = arith.constant 0 : index
    %55 = vector.load %arg13[%c0_55, %c0_56] : memref<4x768xf32, #tpu.memory_space<vmem>>, vector<4x128xf32>
    tpu.vector_store %arg13[%c0_55, %c0_56], %54 {strides = array<i32>} : memref<4x768xf32, #tpu.memory_space<vmem>>, vector<4x128xf32>,
    %cst_57 = arith.constant 0.000000e+00 : f32
    %56 = vector.broadcast %cst_57 : f32 to vector<4x128xf32>
    %c0_58 = arith.constant 0 : index
    %c640_59 = arith.constant 640 : index
    %57 = vector.load %arg13[%c0_58, %c640_59] : memref<4x768xf32, #tpu.memory_space<vmem>>, vector<4x128xf32>
    tpu.vector_store %arg13[%c0_58, %c640_59], %56 {strides = array<i32>} : memref<4x768xf32, #tpu.memory_space<vmem>>, vector<4x128xf32>,
    %c0_60 = arith.constant 0 : index
    %c128_61 = arith.constant 128 : index
    %58 = vector.load %arg13[%c0_60, %c128_61] : memref<4x768xf32, #tpu.memory_space<vmem>>, vector<4x512xf32>
    tpu.vector_store %arg13[%c0_60, %c128_61], %53 {strides = array<i32>} : memref<4x768xf32, #tpu.memory_space<vmem>>, vector<4x512xf32>,
    %c0_62 = arith.constant 0 : index
    %c129_63 = arith.constant 129 : index
    %59 = vector.load %arg13[%c0_62, %c129_63] : memref<4x768xf32, #tpu.memory_space<vmem>>, vector<4x512xf32>
    %60 = arith.maximumf %53, %59 : vector<4x512xf32>
    %c0_64 = arith.constant 0 : index
    %c144_65 = arith.constant 144 : index
    %61 = vector.load %arg13[%c0_64, %c144_65] : memref<4x768xf32, #tpu.memory_space<vmem>>, vector<4x512xf32>
    %62 = arith.maximumf %60, %61 : vector<4x512xf32>
    %c0_66 = arith.constant 0 : index
    %c145_67 = arith.constant 145 : index
    %63 = vector.load %arg13[%c0_66, %c145_67] : memref<4x768xf32, #tpu.memory_space<vmem>>, vector<4x512xf32>
    %64 = arith.maximumf %62, %63 : vector<4x512xf32>
    %cst_68 = arith.constant 0.000000e+00 : f32
    %65 = vector.broadcast %cst_68 : f32 to vector<4x128xf32>
    %c0_69 = arith.constant 0 : index
    %c0_70 = arith.constant 0 : index
    %66 = vector.load %arg14[%c0_69, %c0_70] : memref<4x768xf32, #tpu.memory_space<vmem>>, vector<4x128xf32>
    tpu.vector_store %arg14[%c0_69, %c0_70], %65 {strides = array<i32>} : memref<4x768xf32, #tpu.memory_space<vmem>>, vector<4x128xf32>,
    %cst_71 = arith.constant 0.000000e+00 : f32
    %67 = vector.broadcast %cst_71 : f32 to vector<4x128xf32>
    %c0_72 = arith.constant 0 : index
    %c640_73 = arith.constant 640 : index
    %68 = vector.load %arg14[%c0_72, %c640_73] : memref<4x768xf32, #tpu.memory_space<vmem>>, vector<4x128xf32>
    tpu.vector_store %arg14[%c0_72, %c640_73], %67 {strides = array<i32>} : memref<4x768xf32, #tpu.memory_space<vmem>>, vector<4x128xf32>,
    %c0_74 = arith.constant 0 : index
    %c128_75 = arith.constant 128 : index
    %69 = vector.load %arg14[%c0_74, %c128_75] : memref<4x768xf32, #tpu.memory_space<vmem>>, vector<4x512xf32>
    tpu.vector_store %arg14[%c0_74, %c128_75], %64 {strides = array<i32>} : memref<4x768xf32, #tpu.memory_space<vmem>>, vector<4x512xf32>,
    %c0_76 = arith.constant 0 : index
    %c94 = arith.constant 94 : index
    %70 = vector.load %arg14[%c0_76, %c94] : memref<4x768xf32, #tpu.memory_space<vmem>>, vector<4x512xf32>
    %c0_77 = arith.constant 0 : index
    %c0_78 = arith.constant 0 : index
    %71 = vector.load %arg6[%c0_77, %c0_78] : memref<9x512xf32, #tpu.memory_space<vmem>>, vector<1x512xf32>
    %72 = vector.broadcast %71 : vector<1x512xf32> to vector<4x512xf32>
    %73 = arith.mulf %70, %72 : vector<4x512xf32>
    %c0_79 = arith.constant 0 : index
    %c0_80 = arith.constant 0 : index
    %74 = vector.load %arg17[%c0_79, %c0_80] : memref<36x512xf32, #tpu.memory_space<vmem>>, vector<4x512xf32>
    tpu.vector_store %arg17[%c0_79, %c0_80], %73 {strides = array<i32>} : memref<36x512xf32, #tpu.memory_space<vmem>>, vector<4x512xf32>,
    %c0_81 = arith.constant 0 : index
    %c96 = arith.constant 96 : index
    %75 = vector.load %arg14[%c0_81, %c96] : memref<4x768xf32, #tpu.memory_space<vmem>>, vector<4x512xf32>
    %c1_82 = arith.constant 1 : index
    %c0_83 = arith.constant 0 : index
    %76 = vector.load %arg6[%c1_82, %c0_83] : memref<9x512xf32, #tpu.memory_space<vmem>>, vector<1x512xf32>
    %77 = vector.broadcast %76 : vector<1x512xf32> to vector<4x512xf32>
    %78 = arith.mulf %75, %77 : vector<4x512xf32>
    %c4_84 = arith.constant 4 : index
    %c0_85 = arith.constant 0 : index
    %79 = vector.load %arg17[%c4_84, %c0_85] : memref<36x512xf32, #tpu.memory_space<vmem>>, vector<4x512xf32>
    tpu.vector_store %arg17[%c4_84, %c0_85], %78 {strides = array<i32>} : memref<36x512xf32, #tpu.memory_space<vmem>>, vector<4x512xf32>,
    %c0_86 = arith.constant 0 : index
    %c98 = arith.constant 98 : index
    %80 = vector.load %arg14[%c0_86, %c98] : memref<4x768xf32, #tpu.memory_space<vmem>>, vector<4x512xf32>
    %c2_87 = arith.constant 2 : index
    %c0_88 = arith.constant 0 : index
    %81 = vector.load %arg6[%c2_87, %c0_88] : memref<9x512xf32, #tpu.memory_space<vmem>>, vector<1x512xf32>
    %82 = vector.broadcast %81 : vector<1x512xf32> to vector<4x512xf32>
    %83 = arith.mulf %80, %82 : vector<4x512xf32>
    %c8_89 = arith.constant 8 : index
    %c0_90 = arith.constant 0 : index
    %84 = vector.load %arg17[%c8_89, %c0_90] : memref<36x512xf32, #tpu.memory_space<vmem>>, vector<4x512xf32>
    tpu.vector_store %arg17[%c8_89, %c0_90], %83 {strides = array<i32>} : memref<36x512xf32, #tpu.memory_space<vmem>>, vector<4x512xf32>,
    %c0_91 = arith.constant 0 : index
    %c126 = arith.constant 126 : index
    %85 = vector.load %arg14[%c0_91, %c126] : memref<4x768xf32, #tpu.memory_space<vmem>>, vector<4x512xf32>
    %c3_92 = arith.constant 3 : index
    %c0_93 = arith.constant 0 : index
    %86 = vector.load %arg6[%c3_92, %c0_93] : memref<9x512xf32, #tpu.memory_space<vmem>>, vector<1x512xf32>
    %87 = vector.broadcast %86 : vector<1x512xf32> to vector<4x512xf32>
    %88 = arith.mulf %85, %87 : vector<4x512xf32>
    %c12 = arith.constant 12 : index
    %c0_94 = arith.constant 0 : index
    %89 = vector.load %arg17[%c12, %c0_94] : memref<36x512xf32, #tpu.memory_space<vmem>>, vector<4x512xf32>
    tpu.vector_store %arg17[%c12, %c0_94], %88 {strides = array<i32>} : memref<36x512xf32, #tpu.memory_space<vmem>>, vector<4x512xf32>,
    %c0_95 = arith.constant 0 : index
    %c128_96 = arith.constant 128 : index
    %90 = vector.load %arg14[%c0_95, %c128_96] : memref<4x768xf32, #tpu.memory_space<vmem>>, vector<4x512xf32>
    %c4_97 = arith.constant 4 : index
    %c0_98 = arith.constant 0 : index
    %91 = vector.load %arg6[%c4_97, %c0_98] : memref<9x512xf32, #tpu.memory_space<vmem>>, vector<1x512xf32>
    %92 = vector.broadcast %91 : vector<1x512xf32> to vector<4x512xf32>
    %93 = arith.mulf %90, %92 : vector<4x512xf32>
    %c16 = arith.constant 16 : index
    %c0_99 = arith.constant 0 : index
    %94 = vector.load %arg17[%c16, %c0_99] : memref<36x512xf32, #tpu.memory_space<vmem>>, vector<4x512xf32>
    tpu.vector_store %arg17[%c16, %c0_99], %93 {strides = array<i32>} : memref<36x512xf32, #tpu.memory_space<vmem>>, vector<4x512xf32>,
    %c0_100 = arith.constant 0 : index
    %c130 = arith.constant 130 : index
    %95 = vector.load %arg14[%c0_100, %c130] : memref<4x768xf32, #tpu.memory_space<vmem>>, vector<4x512xf32>
    %c5_101 = arith.constant 5 : index
    %c0_102 = arith.constant 0 : index
    %96 = vector.load %arg6[%c5_101, %c0_102] : memref<9x512xf32, #tpu.memory_space<vmem>>, vector<1x512xf32>
    %97 = vector.broadcast %96 : vector<1x512xf32> to vector<4x512xf32>
    %98 = arith.mulf %95, %97 : vector<4x512xf32>
    %c20 = arith.constant 20 : index
    %c0_103 = arith.constant 0 : index
    %99 = vector.load %arg17[%c20, %c0_103] : memref<36x512xf32, #tpu.memory_space<vmem>>, vector<4x512xf32>
    tpu.vector_store %arg17[%c20, %c0_103], %98 {strides = array<i32>} : memref<36x512xf32, #tpu.memory_space<vmem>>, vector<4x512xf32>,
    %c0_104 = arith.constant 0 : index
    %c158 = arith.constant 158 : index
    %100 = vector.load %arg14[%c0_104, %c158] : memref<4x768xf32, #tpu.memory_space<vmem>>, vector<4x512xf32>
    %c6_105 = arith.constant 6 : index
    %c0_106 = arith.constant 0 : index
    %101 = vector.load %arg6[%c6_105, %c0_106] : memref<9x512xf32, #tpu.memory_space<vmem>>, vector<1x512xf32>
    %102 = vector.broadcast %101 : vector<1x512xf32> to vector<4x512xf32>
    %103 = arith.mulf %100, %102 : vector<4x512xf32>
    %c24 = arith.constant 24 : index
    %c0_107 = arith.constant 0 : index
    %104 = vector.load %arg17[%c24, %c0_107] : memref<36x512xf32, #tpu.memory_space<vmem>>, vector<4x512xf32>
    tpu.vector_store %arg17[%c24, %c0_107], %103 {strides = array<i32>} : memref<36x512xf32, #tpu.memory_space<vmem>>, vector<4x512xf32>,
    %c0_108 = arith.constant 0 : index
    %c160 = arith.constant 160 : index
    %105 = vector.load %arg14[%c0_108, %c160] : memref<4x768xf32, #tpu.memory_space<vmem>>, vector<4x512xf32>
    %c7_109 = arith.constant 7 : index
    %c0_110 = arith.constant 0 : index
    %106 = vector.load %arg6[%c7_109, %c0_110] : memref<9x512xf32, #tpu.memory_space<vmem>>, vector<1x512xf32>
    %107 = vector.broadcast %106 : vector<1x512xf32> to vector<4x512xf32>
    %108 = arith.mulf %105, %107 : vector<4x512xf32>
    %c28 = arith.constant 28 : index
    %c0_111 = arith.constant 0 : index
    %109 = vector.load %arg17[%c28, %c0_111] : memref<36x512xf32, #tpu.memory_space<vmem>>, vector<4x512xf32>
    tpu.vector_store %arg17[%c28, %c0_111], %108 {strides = array<i32>} : memref<36x512xf32, #tpu.memory_space<vmem>>, vector<4x512xf32>,
    %c0_112 = arith.constant 0 : index
    %c162 = arith.constant 162 : index
    %110 = vector.load %arg14[%c0_112, %c162] : memref<4x768xf32, #tpu.memory_space<vmem>>, vector<4x512xf32>
    %c8_113 = arith.constant 8 : index
    %c0_114 = arith.constant 0 : index
    %111 = vector.load %arg6[%c8_113, %c0_114] : memref<9x512xf32, #tpu.memory_space<vmem>>, vector<1x512xf32>
    %112 = vector.broadcast %111 : vector<1x512xf32> to vector<4x512xf32>
    %113 = arith.mulf %110, %112 : vector<4x512xf32>
    %c32 = arith.constant 32 : index
    %c0_115 = arith.constant 0 : index
    %114 = vector.load %arg17[%c32, %c0_115] : memref<36x512xf32, #tpu.memory_space<vmem>>, vector<4x512xf32>
    tpu.vector_store %arg17[%c32, %c0_115], %113 {strides = array<i32>} : memref<36x512xf32, #tpu.memory_space<vmem>>, vector<4x512xf32>,
    %c0_116 = arith.constant 0 : index
    %c0_117 = arith.constant 0 : index
    %115 = vector.load %arg5[%c0_116, %c0_117] : memref<8x36xf32, #tpu.memory_space<vmem>>, vector<8x36xf32>
    %c0_118 = arith.constant 0 : index
    %c0_119 = arith.constant 0 : index
    %116 = vector.load %arg17[%c0_118, %c0_119] : memref<36x512xf32, #tpu.memory_space<vmem>>, vector<36x512xf32>
    %cst_120 = arith.constant dense<0.000000e+00> : vector<8x512xf32>
    %117 = tpu.matmul %115, %116, %cst_120 {dimension_numbers = #tpu.dot_dimension_numbers<[1], [0], [0], [1], [0, 0, 1, 1], [], []>} : vector<8x36xf32>, vector<36x512xf32>, vector<8x512xf32> -> vector<8x512xf32>
    %c0_121 = arith.constant 0 : index
    %c0_122 = arith.constant 0 : index
    %118 = vector.load %arg7[%c0_121, %c0_122] : memref<8x1xf32, #tpu.memory_space<vmem>>, vector<8x1xf32>
    %119 = vector.broadcast %118 : vector<8x1xf32> to vector<8x512xf32>
    %120 = arith.mulf %117, %119 : vector<8x512xf32>
    %c0_123 = arith.constant 0 : index
    %c0_124 = arith.constant 0 : index
    %121 = vector.load %arg8[%c0_123, %c0_124] : memref<8x1xf32, #tpu.memory_space<vmem>>, vector<8x1xf32>
    %122 = vector.broadcast %121 : vector<8x1xf32> to vector<8x512xf32>
    %123 = arith.addf %120, %122 : vector<8x512xf32>
    %cst_125 = arith.constant 0.00999999977 : f32
    %124 = vector.broadcast %cst_125 : f32 to vector<8x512xf32>
    %125 = arith.mulf %124, %123 : vector<8x512xf32>
    %126 = arith.maximumf %123, %125 : vector<8x512xf32>
    %cst_126 = arith.constant 0.000000e+00 : f32
    %127 = vector.broadcast %cst_126 : f32 to vector<8x128xf32>
    %c0_127 = arith.constant 0 : index
    %c0_128 = arith.constant 0 : index
    %128 = vector.load %arg15[%c0_127, %c0_128] : memref<8x768xf32, #tpu.memory_space<vmem>>, vector<8x128xf32>
    tpu.vector_store %arg15[%c0_127, %c0_128], %127 {strides = array<i32>} : memref<8x768xf32, #tpu.memory_space<vmem>>, vector<8x128xf32>,
    %cst_129 = arith.constant 0.000000e+00 : f32
    %129 = vector.broadcast %cst_129 : f32 to vector<8x128xf32>
    %c0_130 = arith.constant 0 : index
    %c640_131 = arith.constant 640 : index
    %130 = vector.load %arg15[%c0_130, %c640_131] : memref<8x768xf32, #tpu.memory_space<vmem>>, vector<8x128xf32>
    tpu.vector_store %arg15[%c0_130, %c640_131], %129 {strides = array<i32>} : memref<8x768xf32, #tpu.memory_space<vmem>>, vector<8x128xf32>,
    %c0_132 = arith.constant 0 : index
    %c128_133 = arith.constant 128 : index
    %131 = vector.load %arg15[%c0_132, %c128_133] : memref<8x768xf32, #tpu.memory_space<vmem>>, vector<8x512xf32>
    tpu.vector_store %arg15[%c0_132, %c128_133], %126 {strides = array<i32>} : memref<8x768xf32, #tpu.memory_space<vmem>>, vector<8x512xf32>,
    %c0_134 = arith.constant 0 : index
    %c130_135 = arith.constant 130 : index
    %132 = vector.load %arg15[%c0_134, %c130_135] : memref<8x768xf32, #tpu.memory_space<vmem>>, vector<8x512xf32>
    %133 = arith.maximumf %126, %132 : vector<8x512xf32>
    %c0_136 = arith.constant 0 : index
    %c160_137 = arith.constant 160 : index
    %134 = vector.load %arg15[%c0_136, %c160_137] : memref<8x768xf32, #tpu.memory_space<vmem>>, vector<8x512xf32>
    %135 = arith.maximumf %133, %134 : vector<8x512xf32>
    %c0_138 = arith.constant 0 : index
    %c162_139 = arith.constant 162 : index
    %136 = vector.load %arg15[%c0_138, %c162_139] : memref<8x768xf32, #tpu.memory_space<vmem>>, vector<8x512xf32>
    %137 = arith.maximumf %135, %136 : vector<8x512xf32>
    %c0_140 = arith.constant 0 : index
    %c0_141 = arith.constant 0 : index
    %c0_142 = arith.constant 0 : index
    %138 = vector.load %arg9[%c0_140, %c0_141, %c0_142] : memref<4x8x512xf32, #tpu.memory_space<vmem>>, vector<1x8x512xf32>
    %139 = vector.shape_cast %138 : vector<1x8x512xf32> to vector<8x512xf32>
    %140 = arith.mulf %137, %139 : vector<8x512xf32>
    %cst_143 = arith.constant dense<0.000000e+00> : vector<8xf32>
    %141 = vector.multi_reduction <add>, %140, %cst_143 [1] : vector<8x512xf32> to vector<8xf32>
    %142 = vector.shape_cast %141 : vector<8xf32> to vector<8x1xf32>
    %cst_144 = arith.constant dense<0.000000e+00> : vector<1xf32>
    %143 = vector.multi_reduction <add>, %142, %cst_144 [0] : vector<8x1xf32> to vector<1xf32>
    %144 = vector.shape_cast %143 : vector<1xf32> to vector<1x1xf32>
    %c0_145 = arith.constant 0 : index
    %c0_146 = arith.constant 0 : index
    %145 = vector.load %arg10[%c0_145, %c0_146] : memref<1x2xf32, #tpu.memory_space<vmem>>, vector<1x1xf32>
    %146 = arith.addf %144, %145 : vector<1x1xf32>
    %c0_147 = arith.constant 0 : index
    %c0_148 = arith.constant 0 : index
    %147 = vector.load %arg11[%c0_147, %c0_148] : memref<2x2xf32, #tpu.memory_space<vmem>>, vector<1x1xf32>
    tpu.vector_store %arg11[%c0_147, %c0_148], %146 {strides = array<i32>} : memref<2x2xf32, #tpu.memory_space<vmem>>, vector<1x1xf32>,
    %c1_149 = arith.constant 1 : index
    %c0_150 = arith.constant 0 : index
    %c0_151 = arith.constant 0 : index
    %148 = vector.load %arg9[%c1_149, %c0_150, %c0_151] : memref<4x8x512xf32, #tpu.memory_space<vmem>>, vector<1x8x512xf32>
    %149 = vector.shape_cast %148 : vector<1x8x512xf32> to vector<8x512xf32>
    %150 = arith.mulf %137, %149 : vector<8x512xf32>
    %cst_152 = arith.constant dense<0.000000e+00> : vector<8xf32>
    %151 = vector.multi_reduction <add>, %150, %cst_152 [1] : vector<8x512xf32> to vector<8xf32>
    %152 = vector.shape_cast %151 : vector<8xf32> to vector<8x1xf32>
    %cst_153 = arith.constant dense<0.000000e+00> : vector<1xf32>
    %153 = vector.multi_reduction <add>, %152, %cst_153 [0] : vector<8x1xf32> to vector<1xf32>
    %154 = vector.shape_cast %153 : vector<1xf32> to vector<1x1xf32>
    %c0_154 = arith.constant 0 : index
    %c1_155 = arith.constant 1 : index
    %155 = vector.load %arg10[%c0_154, %c1_155] : memref<1x2xf32, #tpu.memory_space<vmem>>, vector<1x1xf32>
    %156 = arith.addf %154, %155 : vector<1x1xf32>
    %c0_156 = arith.constant 0 : index
    %c1_157 = arith.constant 1 : index
    %157 = vector.load %arg11[%c0_156, %c1_157] : memref<2x2xf32, #tpu.memory_space<vmem>>, vector<1x1xf32>
    tpu.vector_store %arg11[%c0_156, %c1_157], %156 {strides = array<i32>} : memref<2x2xf32, #tpu.memory_space<vmem>>, vector<1x1xf32>,
    %c2_158 = arith.constant 2 : index
    %c0_159 = arith.constant 0 : index
    %c0_160 = arith.constant 0 : index
    %158 = vector.load %arg9[%c2_158, %c0_159, %c0_160] : memref<4x8x512xf32, #tpu.memory_space<vmem>>, vector<1x8x512xf32>
    %159 = vector.shape_cast %158 : vector<1x8x512xf32> to vector<8x512xf32>
    %160 = arith.mulf %137, %159 : vector<8x512xf32>
    %cst_161 = arith.constant dense<0.000000e+00> : vector<8xf32>
    %161 = vector.multi_reduction <add>, %160, %cst_161 [1] : vector<8x512xf32> to vector<8xf32>
    %162 = vector.shape_cast %161 : vector<8xf32> to vector<8x1xf32>
    %cst_162 = arith.constant dense<0.000000e+00> : vector<1xf32>
    %163 = vector.multi_reduction <add>, %162, %cst_162 [0] : vector<8x1xf32> to vector<1xf32>
    %164 = vector.shape_cast %163 : vector<1xf32> to vector<1x1xf32>
    %c0_163 = arith.constant 0 : index
    %c0_164 = arith.constant 0 : index
    %165 = vector.load %arg10[%c0_163, %c0_164] : memref<1x2xf32, #tpu.memory_space<vmem>>, vector<1x1xf32>
    %166 = arith.addf %164, %165 : vector<1x1xf32>
    %c1_165 = arith.constant 1 : index
    %c0_166 = arith.constant 0 : index
    %167 = vector.load %arg11[%c1_165, %c0_166] : memref<2x2xf32, #tpu.memory_space<vmem>>, vector<1x1xf32>
    tpu.vector_store %arg11[%c1_165, %c0_166], %166 {strides = array<i32>} : memref<2x2xf32, #tpu.memory_space<vmem>>, vector<1x1xf32>,
    %c3_167 = arith.constant 3 : index
    %c0_168 = arith.constant 0 : index
    %c0_169 = arith.constant 0 : index
    %168 = vector.load %arg9[%c3_167, %c0_168, %c0_169] : memref<4x8x512xf32, #tpu.memory_space<vmem>>, vector<1x8x512xf32>
    %169 = vector.shape_cast %168 : vector<1x8x512xf32> to vector<8x512xf32>
    %170 = arith.mulf %137, %169 : vector<8x512xf32>
    %cst_170 = arith.constant dense<0.000000e+00> : vector<8xf32>
    %171 = vector.multi_reduction <add>, %170, %cst_170 [1] : vector<8x512xf32> to vector<8xf32>
    %172 = vector.shape_cast %171 : vector<8xf32> to vector<8x1xf32>
    %cst_171 = arith.constant dense<0.000000e+00> : vector<1xf32>
    %173 = vector.multi_reduction <add>, %172, %cst_171 [0] : vector<8x1xf32> to vector<1xf32>
    %174 = vector.shape_cast %173 : vector<1xf32> to vector<1x1xf32>
    %c0_172 = arith.constant 0 : index
    %c1_173 = arith.constant 1 : index
    %175 = vector.load %arg10[%c0_172, %c1_173] : memref<1x2xf32, #tpu.memory_space<vmem>>, vector<1x1xf32>
    %176 = arith.addf %174, %175 : vector<1x1xf32>
    %c1_174 = arith.constant 1 : index
    %c1_175 = arith.constant 1 : index
    %177 = vector.load %arg11[%c1_174, %c1_175] : memref<2x2xf32, #tpu.memory_space<vmem>>, vector<1x1xf32>
    tpu.vector_store %arg11[%c1_174, %c1_175], %176 {strides = array<i32>} : memref<2x2xf32, #tpu.memory_space<vmem>>, vector<1x1xf32>,
    return
  }
}

</mosaic_0001>

<bundles_post_ra>
// kernel: cnn_forward.1
= control target key start
LH: loop header
LB: loop body
LE: loop exit
PB: predicated region body
PF: predicated region fallthrough
CT: control target
= control target key end

     0   :  { %16 = vsyncpa [#allocation9], 0  ;;  %s2042_s0 = inlined_call_operand.vmem [shape: f32[1,512], index: 0, kind: input, shape index: {}]   ;;  %s2043_s1 = inlined_call_operand.vmem [shape: f32[4,9], index: 1, kind: input, shape index: {}]   ;;  %s2044_s2 = inlined_call_operand.hbm [shape: f32[9,512], index: 2, kind: input, shape index: {}]   ;;  %s2045_s3 = inlined_call_operand.vmem [shape: f32[4,1], index: 3, kind: input, shape index: {}]   ;;  %s2046_s4 = inlined_call_operand.vmem [shape: f32[4,1], index: 4, kind: input, shape index: {}]   ;;  %s2047_s5 = inlined_call_operand.vmem [shape: f32[8,36], index: 5, kind: input, shape index: {}]   ;;  %s2048_s6 = inlined_call_operand.hbm [shape: f32[9,512], index: 6, kind: input, shape index: {}]   ;;  %s2049_s7 = inlined_call_operand.vmem [shape: f32[8,1], index: 7, kind: input, shape index: {}]   ;;  %s2050_s8 = inlined_call_operand.vmem [shape: f32[8,1], index: 8, kind: input, shape index: {}]   ;;  %s2051_s9 = inlined_call_operand.hbm [shape: f32[4,8,512], index: 9, kind: input, shape index: {}]   ;;  %s2052_s10 = inlined_call_operand.vmem [shape: f32[1,2], index: 10, kind: input, shape index: {}]   ;;  %s2053_s11 = inlined_call_operand.hbm [shape: f32[2,2], index: 11, kind: output, shape index: {}]  }
   0x1   :  { %17 = vsyncpa [#allocation12], 0 }
   0x2   :  { %18 = vsyncpa [#allocation10], 0  ;;  %s46_s19 = sshll.u32 %s2048_s6, 4  ;;  %s1577_s20 = smov [#allocation11]   ;;  %s47_s19 = int_to_ptr.hbm [resolvable:$true] %s46_s19 }
   0x3   :  { %s48_s21 = sshll.u32 %s1577_s20, 4  ;;  %s27_s24 = sshll.u32 %s2044_s2, 4  ;;  %s49_s21 = int_to_ptr.vmem [resolvable:$true] %s48_s21  ;;  %s28_s24 = int_to_ptr.hbm [resolvable:$true] %s27_s24 }
   0x4   :  { %s1578_s25 = smov 512   ;;  %s1579_s26 = smov 32  }
   0x5   :  { %54 = dma.hbm_to_vmem [thread:$0]  %s47_s19, 1024, %s49_s21, [#allocation12], %s1578_s25, %s1578_s25, %s1579_s26  }
   0x6   :  { %s1580_s27 = smov [#allocation8]   ;;  %s63_s12 = sshll.u32 %s2051_s9, 4  ;;  %s64_s12 = int_to_ptr.hbm [resolvable:$true] %s63_s12 }
   0x7   :  { %s29_s28 = sshll.u32 %s1580_s27, 4  ;;  %s1581_s6 = smov [#allocation13]   ;;  %s30_s28 = int_to_ptr.vmem [resolvable:$true] %s29_s28 }
   0x8   :  { %35 = dma.hbm_to_vmem [thread:$0]  %s28_s24, 1024, %s30_s28, [#allocation9], %s1578_s25, %s1578_s25, %s1579_s26  }
   0x9   :  { %s65_s13 = sshll.u32 %s1581_s6, 4  ;;  %s66_s13 = int_to_ptr.vmem [resolvable:$true] %s65_s13 }
   0xa   :  { %71 = dma.hbm_to_vmem [thread:$0]  %s64_s12, 2048, %s66_s13, [#allocation12], %s1578_s25, %s1578_s25, %s1579_s26  }
   0xb   :  { %1571 = dma.done.wait [#allocation9], 1024  }
   0xc   :  { %1572 = vsyncadd [#allocation9], 4294966272 }
   0xd   :  { %1573 = dma.done.wait [#allocation12], 3072  }
   0xe   :  { %1574 = vsyncadd [#allocation12], 4294964224  ;;  %v86_v0 = vlaneseq  ;;  %v1582_v1 = vmov 0.0   ;;  %v244_v2 = vld [vmem:[#allocation8 + $0x20] ss:$8 sm:$0xf] }
   0xf   :  { %396 = vst [vmem:[#allocation3 + $0x14] sm:$0xf] %v1582_v1  ;;  %v117_v3 = vld [vmem:[#allocation8 + $0x1] ss:$8 sm:$0xf]  ;;  %s1583_s2 = smov 17  }
  0x10   :  { %vm88_vm0 = vcmp.lt.s32.totalorder %v86_v0, 128  ;;  %524 = vst [vmem:[#allocation4] sm:$0xf] %v1582_v1  ;;  %246 = vrot.lane.b32.xlu0 %v244_v2, %s1583_s2  ;;  %s1584_s9 = smov 112   ;;  %s1585_s14 = smov 127   ;;  %vm1684_vm1 = vcmp.lt.s32.totalorder %v86_v0, 512 }
  0x11   :  { %91 = vst.msk [vmem:[#allocation2 + $0x5] sm:$0x1] %vm88_vm0, %v1582_v1  ;;  %119 = vrot.lane.b32.xlu1 %v117_v3, %s1584_s9  ;;  %v159_v4 = vld [vmem:[#allocation8 + $0x3] ss:$8 sm:$0xf]  ;;  %s1586_s15 = smov 111  }
  0x12   :  { %90 = vst.msk [vmem:[#allocation2] sm:$0x1] %vm88_vm0, %v1582_v1  ;;  %161 = vrot.lane.b32.xlu2 %v159_v4, %s1585_s14  ;;  %v97_v5 = vld [vmem:[#allocation8] ss:$8 sm:$0xf]  ;;  %s1587_s16 = smov 113  }
  0x13   :  { %525 = vst [vmem:[#allocation4 + $0x14] sm:$0xf] %v1582_v1  ;;  %v138_v6 = vld [vmem:[#allocation8 + $0x2] ss:$8 sm:$0xf]  ;;  %s1588_s17 = smov 1  }
  0x14   :  { %v187_v7 = vld [vmem:[#allocation8 + $0x5] ss:$8 sm:$0xf]  ;;  %v225_v8 = vld [vmem:[#allocation8 + $0x7] ss:$8 sm:$0xf] }
  0x15   :  { %v206_v9 = vld [vmem:[#allocation8 + $0x6] ss:$8 sm:$0xf]  ;;  %s1589_s18 = smov 16   ;;  %s1590_s19 = smov 15   ;;  %vm110_vm2 = vcmask 138240  }
  0x16   :  { %v92_v11 = vld [vmem:[%s2042_s0] sm:$0xf]  ;;  %vm122_vm3 = vcmask 916480   ;;  %vm172_vm4 = vcmask 7168   ;;  %vm102_vm5 = vcmask 908288   ;;  %vm143_vm6 = vcmask 924672  }
  0x17   :  { %95 = vst.msk [vmem:[#allocation2 + $0x1] sm:$0xf] %vm1684_vm1, %v92_v11  ;;  %vm164_vm7 = vcmask 1039360   ;;  %vm151_vm8 = vcmask 121856   ;;  %vm130_vm9 = vcmask 130048   ;;  %vm274_vm10 = vcmask 1040384  }
  0x18   :  { %99 = vrot.lane.b32.xlu0 %v97_v5, %s1586_s15  ;;  %v180_v2 = vld [vmem:[#allocation8 + $0x4] ss:$8 sm:$0xf]  ;;  %vm270_vm11 = vcmask 72704   ;;  %vm403_vm12 = vcmask 1043456   ;;  %s1593_s25 = smov 96  }
  0x19   :  { %140 = vrot.lane.b32.xlu1 %v138_v6, %s1587_s16  ;;  %s1594_s27 = smov 98   ;;  %s1595_s28 = smov 126   ;;  %vm557_vm13 = vcmask 769024   ;;  %vm623_vm14 = vcmask 785408   ;;  %vm690_vm15 = vcmask 801792   ;;  %vm756_vm0 = vcmask 1031168  }
  0x1a   :  { %189 = vrot.lane.b32.xlu2 %v187_v7, %s1588_s17  ;;  %s1596_s29 = smov 2   ;;  %s1597_s30 = smov 30  }
  0x1b   :  { %s1598_s12 = smov 34   ;;  %s1599_s20 = smov [#allocation14]  }
  0x1c   :  { %s1420_s21 = sshll.u32 %s1599_s20, 4  ;;  %s1422_s23 = sshll.u32 %s2053_s11, 4  ;;  %s1421_s21 = int_to_ptr.vmem [resolvable:$true] %s1420_s21  ;;  %s1423_s23 = int_to_ptr.hbm [resolvable:$true] %s1422_s23 }
  0x1e   :  { %v242_v15 = vld [vmem:[#allocation2 + $0x1] sm:$0x1f] }
  0x1f   :  { %v115_v17 = vld [vmem:[#allocation2] sm:$0x1f] }
  0x20   :  { %208 = vrot.lane.b32.xlu0 %v206_v9, %s1590_s19  ;;  %v185_v27 = vld [vmem:[#allocation2 + $0x1] sm:$0x1f]  ;;  %v377_v9 = vld [vmem:[%s2046_s4] sm:$0xf] }
  0x21   :  { %227 = vrot.lane.b32.xlu1 %v225_v8, %s1589_s18  ;;  %v96_v29 = vld [vmem:[#allocation2] sm:$0x1f]  ;;  %v367_v8 = vld [vmem:[%s2045_s3] sm:$0xf] }
  0x22   :  { %v136_v31 = vld [vmem:[#allocation2] sm:$0x1f] }
  0x23   :  { %v157_v40 = vld [vmem:[#allocation2] sm:$0x1f] }
  0x24   :  { %v204_v42 = vld [vmem:[#allocation2 + $0x1] sm:$0x1f] }
  0x25   :  { %v223_v49 = vld [vmem:[#allocation2 + $0x1] sm:$0x1f] }
  0x26   :  { %v178_v0 = vld [vmem:[#allocation2 + $0x1] sm:$0xf] }
  0x27   :  { %v181_v4 = vmul.f32 %v180_v2, %v178_v0 }
  0x29   :  { %183 = vst.msk [vmem:[#allocation6 + $0x4] ss:$8 sm:$0xf] %vm1684_vm1, %v181_v4 }
  0x6c   :  { %v162_v12 = vpop.permute.xlu2 %161 }
  0x6d   :  { %v163_v38 = vrot.slane %v162_v12, 7 }
  0x6f   :  { %v165_v41 = vsel %vm164_vm7, %v163_v38, %v162_v12  ;;  %v1591_v12 = vmov 0  }
  0x70   :  { %v167_v46 = vmul.f32 %v165_v41, %v157_v40  ;;  %1472 = vset.pattern.permute.xlu1 %v1591_v12  ;;  %1473 = vset.pattern.permute.xlu2 %v1591_v12 }
  0x71   :  { %1474 = vset.pattern.permute.xlu0 %v1591_v12 }
  0x74   :  { %v190_v19 = vpop.permute.xlu2 %189 }
  0x75   :  { %v191_v24 = vrot.slane %v190_v19, 7 }
  0x77   :  { %v192_v28 = vsel %vm172_vm4, %v191_v24, %v190_v19  ;;  %v261_v24 = vld [vmem:[%s2043_s1] sm:$0xf]  ;;  %s1592_s1 = smov 94  }
  0x78   :  { %v194_v35 = vmul.f32 %v192_v28, %v185_v27 }
  0x82   :  { %v247_v13 = vpop.permute.xlu0 %246 }
  0x83   :  { %v120_v14 = vpop.permute.xlu1 %119  ;;  %v248_v16 = vrot.slane %v247_v13, 7 }
  0x84   :  { %v121_v18 = vrot.slane %v120_v14, 7 }
  0x85   :  { %v249_v20 = vsel %vm110_vm2, %v248_v16, %v247_v13 }
  0x86   :  { %v123_v21 = vsel %vm122_vm3, %v121_v18, %v120_v14  ;;  %v251_v22 = vmul.f32 %v249_v20, %v242_v15 }
  0x87   :  { %v125_v23 = vmul.f32 %v123_v21, %v115_v17 }
  0x88   :  { %253 = vrot.lane.b32.xlu2 %v251_v22, %s1586_s15 }
  0x89   :  { %127 = vrot.lane.b32.xlu1 %v125_v23, %s1589_s18 }
  0x8a   :  { %v100_v25 = vpop.permute.xlu0 %99 }
  0x8b   :  { %v141_v26 = vpop.permute.xlu1 %140  ;;  %v101_v30 = vrot.slane %v100_v25, 7 }
  0x8c   :  { %v142_v32 = vrot.slane %v141_v26, 7 }
  0x8d   :  { %v103_v33 = vsel %vm102_vm5, %v101_v30, %v100_v25  ;;  %v450_v30 = vld [vmem:[#allocation3 + $0x14] sm:$0xf] }
  0x8e   :  { %v144_v34 = vsel %vm143_vm6, %v142_v32, %v141_v26  ;;  %v105_v36 = vmul.f32 %v103_v33, %v96_v29  ;;  %v412_v29 = vld [vmem:[#allocation3 + $0x14] sm:$0xf] }
  0x8f   :  { %v146_v37 = vmul.f32 %v144_v34, %v136_v31  ;;  %420 = vst [vmem:[#allocation1 + $0x20] ss:$2 sm:$0xff] %v412_v29  ;;  %v488_v32 = vld [vmem:[#allocation3 + $0x14] sm:$0xf] }
  0x90   :  { %107 = vrot.lane.b32.xlu0 %v105_v36, %s1583_s2  ;;  %v541_v34 = vld [vmem:[#allocation11] ss:$8 sm:$0xf] }
  0x91   :  { %148 = vrot.lane.b32.xlu2 %v146_v37, %s1590_s19  ;;  %196 = vrot.lane.b32.xlu1 %v194_v35, %s1585_s14  ;;  %v546_v35 = vperm.slane %v541_v34, 3  ;;  %v544_v36 = vperm.slane %v541_v34, 1  ;;  %v545_v37 = vperm.slane %v541_v34, 2 }
  0x92   :  { %v209_v39 = vpop.permute.xlu0 %208 }
  0x93   :  { %v210_v43 = vrot.slane %v209_v39, 7  ;;  %v228_v44 = vpop.permute.xlu1 %227  ;;  %v548_v38 = vrot.slane %v546_v35, 4  ;;  %v547_v40 = vrot.slane %v544_v36, 4 }
  0x94   :  { %v229_v48 = vrot.slane %v228_v44, 7 }
  0x95   :  { %v211_v45 = vsel %vm151_vm8, %v210_v43, %v209_v39  ;;  %v543_v39 = vperm.slane %v541_v34, 0  ;;  %v550_v41 = vsel %vm403_vm12, %v545_v37, %v548_v38  ;;  %v841_v38 = vld [vmem:[#allocation11 + $0x5] ss:$8 sm:$0xf] }
  0x96   :  { %v213_v47 = vmul.f32 %v211_v45, %v204_v42  ;;  %v230_v50 = vsel %vm130_vm9, %v229_v48, %v228_v44  ;;  %v425_v10 = vld.sshfl [vmem:[#allocation1 + $0x20] sm:$0xff pattern:$0x75316420] }
  0x97   :  { %v232_v51 = vmul.f32 %v230_v50, %v223_v49  ;;  %458 = vst [vmem:[#allocation1 + $0x20] ss:$2 sm:$0xff] %v450_v30  ;;  %v549_v42 = vsel %vm403_vm12, %v543_v39, %v547_v40  ;;  %v906_v39 = vld [vmem:[#allocation11 + $0x6] ss:$8 sm:$0xf] }
  0x98   :  { %169 = vrot.lane.b32.xlu0 %v167_v46, %s1588_s17 }
  0x99   :  { %215 = vrot.lane.b32.xlu2 %v213_v47, %s1587_s16  ;;  %370 = vperm.xlu1 %1472, %v367_v8  }
  0x9e   :  { %v463_v31 = vld.sshfl [vmem:[#allocation1 + $0x20] sm:$0xff pattern:$0x75316420] }
  0x9f   :  { %496 = vst [vmem:[#allocation1 + $0x20] ss:$2 sm:$0xff] %v488_v32 }
  0xa0   :  { %234 = vrot.lane.b32.xlu0 %v232_v51, %s1584_s9 }
  0xa1   :  { %380 = vperm.xlu2 %1473, %v377_v9  }
  0xa6   :  { %v501_v33 = vld.sshfl [vmem:[#allocation1 + $0x20] sm:$0xff pattern:$0x75316420] }
  0xa7   :  { %510 = vrot.lane.b32.xlu1 %v501_v33, %s1586_s15 }
  0xa8   :  { %434 = vrot.lane.b32.xlu0 %v425_v10, %s1585_s14 }
  0xa9   :  { %472 = vrot.lane.b32.xlu2 %v463_v31, %s1584_s9 }
  0xaf   :  { %553 = vrot.lane.b32.xlu1 %v550_v41, %s1592_s1 }
  0xb0   :  { %551 = vrot.lane.b32.xlu0 %v549_v42, %s1592_s1 }
  0xe2   :  { %v254_v52 = vpop.permute.xlu2 %253 }
  0xe3   :  { %v255_v53 = vrot.slane %v254_v52, 1 }
  0xe5   :  { %v256_v54 = vsel %vm102_vm5, %v254_v52, %v255_v53 }
  0xe6   :  { %259 = vst.msk [vmem:[#allocation6 + $0x20] ss:$8 sm:$0xf] %vm1684_vm1, %v256_v54 }
  0xeb   :  { %v149_v55 = vpop.permute.xlu2 %148 }
  0xec   :  { %v150_v56 = vrot.slane %v149_v55, 1 }
  0xed   :  { %v266_v57 = vld [vmem:[#allocation6 + $0x20] sm:$0x1]  ;;  %v267_v58 = vld [vmem:[#allocation6 + $0x28] sm:$0x1]  ;;  %v268_v59 = vld [vmem:[#allocation6 + $0x30] sm:$0x1] }
  0xee   :  { %v152_v60 = vsel %vm151_vm8, %v149_v55, %v150_v56  ;;  %1433 = vmatpush.msk.msra.mxu0 %vm274_vm10, %v266_v57  ;;  %1435 = vmatpush.msk.msra.mxu1 %vm274_vm10, %v267_v58  ;;  %v269_v61 = vld [vmem:[#allocation6 + $0x38] sm:$0x1] }
  0xef   :  { %155 = vst.msk [vmem:[#allocation6 + $0x2] ss:$8 sm:$0xf] %vm1684_vm1, %v152_v60  ;;  %1437 = vmatpush.msk.msra.mxu2 %vm274_vm10, %v268_v59  ;;  %1439 = vmatpush.msk.msra.mxu3 %vm274_vm10, %v269_v61 }
  0xf3   :  { %v216_v62 = vpop.permute.xlu2 %215 }
  0xf4   :  { %v217_v63 = vrot.slane %v216_v62, 1 }
  0xf6   :  { %v218_v3 = vsel %vm143_vm6, %v216_v62, %v217_v63  ;;  %vm1343_vm6 = vcmask 0  }
  0xf7   :  { %221 = vst.msk [vmem:[#allocation6 + $0x6] ss:$8 sm:$0xf] %vm1684_vm1, %v218_v3 }
  0xfb   :  { %v128_v5 = vpop.permute.xlu1 %127  ;;  %v381_v44 = vpop.permute.xlu2 %380 }
  0xfc   :  { %v129_v6 = vrot.slane %v128_v5, 1 }
  0xfe   :  { %v131_v7 = vsel %vm130_vm9, %v128_v5, %v129_v6 }
  0xff   :  { %134 = vst.msk [vmem:[#allocation6 + $0x1] ss:$8 sm:$0xf] %vm1684_vm1, %v131_v7 }
 0x102   :  { %v108_v11 = vpop.permute.xlu0 %107 }
 0x103   :  { %v109_v13 = vrot.slane %v108_v11, 1  ;;  %v197_v14 = vpop.permute.xlu1 %196 }
 0x104   :  { %v198_v15 = vrot.slane %v197_v14, 1 }
 0x105   :  { %v111_v16 = vsel %vm110_vm2, %v108_v11, %v109_v13  ;;  %vm723_vm2 = vcmask 244736  }
 0x106   :  { %113 = vst.msk [vmem:[#allocation6] ss:$8 sm:$0xf] %vm1684_vm1, %v111_v16  ;;  %v199_v17 = vsel %vm164_vm7, %v197_v14, %v198_v15  ;;  %v607_v15 = vld [vmem:[#allocation11 + $0x1] ss:$8 sm:$0xf] }
 0x107   :  { %202 = vst.msk [vmem:[#allocation6 + $0x5] ss:$8 sm:$0xf] %vm1684_vm1, %v199_v17  ;;  %v674_v16 = vld [vmem:[#allocation11 + $0x2] ss:$8 sm:$0xf] }
 0x108   :  { %v609_v32 = vperm.slane %v607_v15, 0  ;;  %v679_v41 = vperm.slane %v674_v16, 3 }
 0x10a   :  { %v170_v18 = vpop.permute.xlu0 %169 }
 0x10b   :  { %v171_v19 = vrot.slane %v170_v18, 1  ;;  %v371_v43 = vpop.permute.xlu1 %370 }
 0x10d   :  { %v173_v20 = vsel %vm172_vm4, %v170_v18, %v171_v19  ;;  %v612_v18 = vperm.slane %v607_v15, 3  ;;  %v677_v19 = vperm.slane %v674_v16, 1  ;;  %vm590_vm4 = vcmask 277504  }
 0x10e   :  { %176 = vst.msk [vmem:[#allocation6 + $0x3] ss:$8 sm:$0xf] %vm1684_vm1, %v173_v20 }
 0x112   :  { %v235_v21 = vpop.permute.xlu0 %234 }
 0x113   :  { %v236_v22 = vrot.slane %v235_v21, 1 }
 0x115   :  { %v237_v23 = vsel %vm122_vm3, %v235_v21, %v236_v22  ;;  %v611_v22 = vperm.slane %v607_v15, 2 }
 0x116   :  { %240 = vst.msk [vmem:[#allocation6 + $0x7] ss:$8 sm:$0xf] %vm1684_vm1, %v237_v23  ;;  %v614_v23 = vrot.slane %v612_v18, 4  ;;  %vm790_vm1 = vcmask 15360  }
 0x118   :  { %v616_v29 = vsel %vm403_vm12, %v611_v22, %v614_v23 }
 0x11a   :  { %v435_v23 = vpop.permute.xlu0 %434 }
 0x11d   :  { %v262_v25 = vld [vmem:[#allocation6] sm:$0xff]  ;;  %v263_v26 = vld [vmem:[#allocation6 + $0x8] sm:$0xff]  ;;  %v264_v27 = vld [vmem:[#allocation6 + $0x10] sm:$0xff] }
 0x11e   :  { %302 = vmatpush.msra.mxu0 %v262_v25  ;;  %322 = vmatpush.msra.mxu1 %v263_v26  ;;  %v265_v28 = vld [vmem:[#allocation6 + $0x18] sm:$0xff]  ;;  %v680_v25 = vrot.slane %v677_v19, 4 }
 0x11f   :  { %342 = vmatpush.msra.mxu2 %v264_v27  ;;  %362 = vmatpush.msra.mxu3 %v265_v28  ;;  %v740_v26 = vld [vmem:[#allocation11 + $0x3] ss:$8 sm:$0xf]  ;;  %v610_v27 = vperm.slane %v607_v15, 1 }
 0x120   :  { %1434 = vmatmul.msk.f32.vlgmr.msra.gmra.mxu0 %vm270_vm11, %v261_v24  ;;  %1436 = vmatmul.msk.f32.vlgmr.msra.gmra.mxu1 %vm270_vm11, %v261_v24  ;;  %v743_v30 = vperm.slane %v740_v26, 1  ;;  %v745_v31 = vperm.slane %v740_v26, 3  ;;  %v742_v34 = vperm.slane %v740_v26, 0  ;;  %v744_v36 = vperm.slane %v740_v26, 2 }
 0x121   :  { %1438 = vmatmul.msk.f32.vlgmr.msra.gmra.mxu2 %vm270_vm11, %v261_v24  ;;  %1440 = vmatmul.msk.f32.vlgmr.msra.gmra.mxu3 %vm270_vm11, %v261_v24  ;;  %v676_v24 = vperm.slane %v674_v16, 0  ;;  %v613_v33 = vrot.slane %v610_v27, 4 }
 0x122   :  { %v746_v35 = vrot.slane %v743_v30, 4  ;;  %v747_v37 = vrot.slane %v745_v31, 4  ;;  %v552_v26 = vpop.permute.xlu0 %551 }
 0x123   :  { %v682_v10 = vsel %vm403_vm12, %v676_v24, %v680_v25  ;;  %v615_v40 = vsel %vm403_vm12, %v609_v32, %v613_v33  ;;  %v511_v24 = vpop.permute.xlu1 %510  ;;  %v473_v25 = vpop.permute.xlu2 %472 }
 0x124   :  { %v748_v42 = vsel %vm403_vm12, %v742_v34, %v746_v35 }
 0x12b   :  { %v554_v27 = vpop.permute.xlu1 %553 }
 0x19d   :  { %v304_v45 = vpop.f32.mrf.mxu0  ;;  %v324_v46 = vpop.f32.mrf.mxu1 }
 0x19e   :  { %v373_v47 = vmul.f32 %v371_v43, %v304_v45  ;;  %v374_v48 = vmul.f32 %v371_v43, %v324_v46  ;;  %v909_v45 = vperm.slane %v906_v39, 1  ;;  %v678_v46 = vperm.slane %v674_v16, 2 }
 0x1a0   :  { %v383_v49 = vadd.f32 %v381_v44, %v373_v47  ;;  %v384_v50 = vadd.f32 %v381_v44, %v374_v48  ;;  %v681_v47 = vrot.slane %v679_v41, 4  ;;  %v845_v48 = vperm.slane %v841_v38, 2 }
 0x1a2   :  { %v387_v51 = vmul.f32 0.01, %v383_v49  ;;  %v388_v52 = vmul.f32 0.01, %v384_v50 }
 0x1a4   :  { %v1750_v53 = vmax.f32 %v384_v50, %v388_v52  ;;  %v344_v54 = vpop.f32.mrf.mxu2  ;;  %v364_v55 = vpop.f32.mrf.mxu3  ;;  %v1752_v58 = vmax.f32 %v383_v49, %v387_v51  ;;  %v908_v50 = vperm.slane %v906_v39, 0  ;;  %v912_v51 = vrot.slane %v909_v45, 4  ;;  %v970_v52 = vld [vmem:[#allocation11 + $0x7] ss:$8 sm:$0xf] }
 0x1a5   :  { %v375_v56 = vmul.f32 %v371_v43, %v344_v54  ;;  %v376_v57 = vmul.f32 %v371_v43, %v364_v55  ;;  %v749_v43 = vsel %vm403_vm12, %v744_v36, %v747_v37  ;;  %v683_v54 = vsel %vm403_vm12, %v678_v46, %v681_v47 }
 0x1a6   :  { %v401_v59 = vrot.slane %v1750_v53, 4  ;;  %v844_v55 = vperm.slane %v841_v38, 1 }
 0x1a7   :  { %v385_v60 = vadd.f32 %v381_v44, %v375_v56  ;;  %v386_v61 = vadd.f32 %v381_v44, %v376_v57  ;;  %v846_v44 = vperm.slane %v841_v38, 3  ;;  %v914_v57 = vsel %vm403_vm12, %v908_v50, %v912_v51 }
 0x1a8   :  { %v404_v62 = vsel %vm403_vm12, %v1752_v58, %v401_v59  ;;  %v973_v59 = vperm.slane %v970_v52, 1 }
 0x1a9   :  { %v389_v63 = vmul.f32 0.01, %v385_v60  ;;  %v390_v0 = vmul.f32 0.01, %v386_v61  ;;  %416 = vst [vmem:[#allocation1] ss:$2 sm:$0xff] %v404_v62 }
 0x1aa   :  { %v848_v49 = vrot.slane %v846_v44, 4 }
 0x1ab   :  { %v1757_v2 = vmax.f32 %v386_v61, %v390_v0  ;;  %v1759_v3 = vmax.f32 %v385_v60, %v389_v63  ;;  %v975_v60 = vperm.slane %v970_v52, 3  ;;  %v843_v61 = vperm.slane %v841_v38, 0 }
 0x1ac   :  { %v850_v56 = vsel %vm403_vm12, %v845_v48, %v848_v49  ;;  %v972_v63 = vperm.slane %v970_v52, 0  ;;  %v976_v0 = vrot.slane %v973_v59, 4 }
 0x1ad   :  { %v402_v4 = vrot.slane %v1757_v2, 4 }
 0x1af   :  { %v405_v5 = vsel %vm403_vm12, %v1759_v3, %v402_v4  ;;  %v974_v4 = vperm.slane %v970_v52, 2 }
 0x1b0   :  { %418 = vst [vmem:[#allocation1 + $0x10] ss:$2 sm:$0xff] %v405_v5  ;;  %v422_v6 = vld.sshfl [vmem:[#allocation1 + $0x8] sm:$0xff pattern:$0x75316420] }
 0x1b1   :  { %428 = vrot.lane.b32.xlu0 %v422_v6, %s1585_s14  ;;  %v421_v7 = vld.sshfl [vmem:[#allocation1] sm:$0xff pattern:$0x75316420] }
 0x1b2   :  { %426 = vrot.lane.b32.xlu1 %v421_v7, %s1585_s14  ;;  %454 = vst [vmem:[#allocation1] ss:$2 sm:$0xff] %v404_v62  ;;  %v1035_v6 = vld [vmem:[#allocation11 + $0x20] ss:$8 sm:$0xf] }
 0x1b3   :  { %v1039_v15 = vperm.slane %v1035_v6, 2  ;;  %v1038_v18 = vperm.slane %v1035_v6, 1 }
 0x1b7   :  { %v424_v8 = vld.sshfl [vmem:[#allocation1 + $0x18] sm:$0xff pattern:$0x75316420]  ;;  %v423_v9 = vld.sshfl [vmem:[#allocation1 + $0x10] sm:$0xff pattern:$0x75316420] }
 0x1b8   :  { %432 = vrot.lane.b32.xlu2 %v424_v8, %s1585_s14  ;;  %456 = vst [vmem:[#allocation1 + $0x10] ss:$2 sm:$0xff] %v405_v5  ;;  %v911_v8 = vperm.slane %v906_v39, 3 }
 0x1b9   :  { %v459_v11 = vld.sshfl [vmem:[#allocation1] sm:$0xff pattern:$0x75316420]  ;;  %v460_v12 = vld.sshfl [vmem:[#allocation1 + $0x8] sm:$0xff pattern:$0x75316420] }
 0x1ba   :  { %430 = vrot.lane.b32.xlu1 %v423_v9, %s1585_s14  ;;  %464 = vrot.lane.b32.xlu0 %v459_v11, %s1584_s9  ;;  %492 = vst [vmem:[#allocation1] ss:$2 sm:$0xff] %v404_v62  ;;  %v847_v62 = vrot.slane %v844_v55, 4  ;;  %v978_v9 = vsel %vm403_vm12, %v972_v63, %v976_v0 }
 0x1bc   :  { %v849_v7 = vsel %vm403_vm12, %v843_v61, %v847_v62 }
 0x1bf   :  { %v462_v13 = vld.sshfl [vmem:[#allocation1 + $0x18] sm:$0xff pattern:$0x75316420]  ;;  %v461_v14 = vld.sshfl [vmem:[#allocation1 + $0x10] sm:$0xff pattern:$0x75316420] }
 0x1c0   :  { %466 = vrot.lane.b32.xlu2 %v460_v12, %s1584_s9  ;;  %494 = vst [vmem:[#allocation1 + $0x10] ss:$2 sm:$0xff] %v405_v5  ;;  %v977_v5 = vrot.slane %v975_v60, 4  ;;  %v1040_v12 = vperm.slane %v1035_v6, 3 }
 0x1c1   :  { %v497_v17 = vld.sshfl [vmem:[#allocation1] sm:$0xff pattern:$0x75316420]  ;;  %v498_v21 = vld.sshfl [vmem:[#allocation1 + $0x8] sm:$0xff pattern:$0x75316420] }
 0x1c2   :  { %470 = vrot.lane.b32.xlu1 %v462_v13, %s1584_s9  ;;  %468 = vrot.lane.b32.xlu0 %v461_v14, %s1584_s9  ;;  %v979_v11 = vsel %vm403_vm12, %v974_v4, %v977_v5  ;;  %v910_v13 = vperm.slane %v906_v39, 2  ;;  %v913_v14 = vrot.slane %v911_v8, 4  ;;  %v1042_v16 = vrot.slane %v1040_v12, 4 }
 0x1c3   :  { %v556_v4 = vrot.slane %v554_v27, 4  ;;  %v555_v5 = vrot.slane %v552_v26, 4 }
 0x1c4   :  { %v1044_v19 = vsel %vm403_vm12, %v1039_v15, %v1042_v16 }
 0x1c5   :  { %v558_v8 = vsel %vm557_vm13, %v555_v5, %v552_v26 }
 0x1c7   :  { %v500_v20 = vld.sshfl [vmem:[#allocation1 + $0x18] sm:$0xff pattern:$0x75316420]  ;;  %v499_v28 = vld.sshfl [vmem:[#allocation1 + $0x10] sm:$0xff pattern:$0x75316420] }
 0x1c8   :  { %502 = vrot.lane.b32.xlu2 %v497_v17, %s1586_s15  ;;  %v915_v17 = vsel %vm403_vm12, %v910_v13, %v913_v14 }
 0x1ca   :  { %508 = vrot.lane.b32.xlu0 %v500_v20, %s1586_s15  ;;  %504 = vrot.lane.b32.xlu1 %v498_v21, %s1586_s15  ;;  %v1037_v20 = vperm.slane %v1035_v6, 0  ;;  %v1041_v21 = vrot.slane %v1038_v18, 4  ;;  %v559_v6 = vsel %vm403_vm12, %v555_v5, %v556_v4 }
 0x1cc   :  { %v1043_v22 = vsel %vm403_vm12, %v1037_v20, %v1041_v21 }
 0x1d0   :  { %506 = vrot.lane.b32.xlu2 %v499_v28, %s1586_s15 }
 0x1d2   :  { %619 = vrot.lane.b32.xlu0 %v616_v29, %s1593_s25  ;;  %684 = vrot.lane.b32.xlu1 %v682_v10, %s1594_s27 }
 0x1d8   :  { %617 = vrot.lane.b32.xlu2 %v615_v40, %s1593_s25 }
 0x1da   :  { %750 = vrot.lane.b32.xlu0 %v748_v42, %s1595_s28  ;;  %752 = vrot.lane.b32.xlu1 %v749_v43, %s1595_s28 }
 0x1e0   :  { %686 = vrot.lane.b32.xlu2 %v683_v54, %s1594_s27 }
 0x1e2   :  { %853 = vrot.lane.b32.xlu0 %v850_v56, %s1596_s29  ;;  %916 = vrot.lane.b32.xlu1 %v914_v57, %s1597_s30 }
 0x1e8   :  { %851 = vrot.lane.b32.xlu2 %v849_v7, %s1596_s29 }
 0x1ea   :  { %980 = vrot.lane.b32.xlu0 %v978_v9, %s1579_s26  ;;  %982 = vrot.lane.b32.xlu1 %v979_v11, %s1579_s26  ;;  %v560_v11 = vsel %vm557_vm13, %v559_v6, %v554_v27 }
 0x1f0   :  { %918 = vrot.lane.b32.xlu2 %v915_v17, %s1597_s30 }
 0x1f2   :  { %1047 = vrot.lane.b32.xlu0 %v1044_v19, %s1598_s12 }
 0x1f8   :  { %1045 = vrot.lane.b32.xlu2 %v1043_v22, %s1598_s12 }
 0x212   :  { %v433_v28 = vpop.permute.xlu2 %432 }
 0x213   :  { %v439_v36 = vsel %vm164_vm7, %v433_v28, %v435_v23 }
 0x214   :  { %v447_v42 = vmax.f32 %v1757_v2, %v439_v36 }
 0x21a   :  { %v467_v30 = vpop.permute.xlu2 %466 }
 0x222   :  { %v503_v33 = vpop.permute.xlu2 %502 }
 0x223   :  { %v429_v29 = vpop.permute.xlu0 %428 }
 0x224   :  { %v427_v10 = vpop.permute.xlu1 %426 }
 0x225   :  { %v436_v38 = vsel %vm164_vm7, %v427_v10, %v429_v29 }
 0x226   :  { %v444_v47 = vmax.f32 %v1752_v58, %v436_v38 }
 0x22a   :  { %v507_v44 = vpop.permute.xlu2 %506 }
 0x22c   :  { %v431_v31 = vpop.permute.xlu1 %430  ;;  %v465_v32 = vpop.permute.xlu0 %464 }
 0x22d   :  { %v437_v37 = vsel %vm164_vm7, %v429_v29, %v431_v31  ;;  %v438_v39 = vsel %vm164_vm7, %v431_v31, %v433_v28  ;;  %v474_v45 = vsel %vm122_vm3, %v465_v32, %v467_v30  ;;  %vm1367_vm7 = vcmask 8200  }
 0x22e   :  { %v445_v43 = vmax.f32 %v1750_v53, %v437_v37  ;;  %v446_v48 = vmax.f32 %v1759_v3, %v438_v39  ;;  %v482_v56 = vmax.f32 %v444_v47, %v474_v45 }
 0x232   :  { %v618_v7 = vpop.permute.xlu2 %617 }
 0x233   :  { %v621_v16 = vrot.slane %v618_v7, 4 }
 0x234   :  { %v471_v34 = vpop.permute.xlu1 %470  ;;  %v469_v35 = vpop.permute.xlu0 %468 }
 0x235   :  { %v477_v40 = vsel %vm122_vm3, %v471_v34, %v473_v25  ;;  %v475_v41 = vsel %vm122_vm3, %v467_v30, %v469_v35  ;;  %v476_v46 = vsel %vm122_vm3, %v469_v35, %v471_v34  ;;  %v624_v27 = vsel %vm623_vm14, %v621_v16, %v618_v7 }
 0x236   :  { %v485_v49 = vmax.f32 %v447_v42, %v477_v40  ;;  %v483_v50 = vmax.f32 %v445_v43, %v475_v41  ;;  %v484_v57 = vmax.f32 %v446_v48, %v476_v46  ;;  %v806_v42 = vld [vmem:[#allocation11 + $0x4] ss:$8 sm:$0xf]  ;;  %vm657_vm3 = vcmask 261120  }
 0x237   :  { %v808_v6 = vperm.slane %v806_v42, 0 }
 0x23a   :  { %v687_v22 = vpop.permute.xlu2 %686 }
 0x23c   :  { %v505_v51 = vpop.permute.xlu1 %504  ;;  %v509_v52 = vpop.permute.xlu0 %508 }
 0x23d   :  { %v512_v54 = vsel %vm102_vm5, %v503_v33, %v505_v51  ;;  %v513_v55 = vsel %vm102_vm5, %v505_v51, %v507_v44  ;;  %v514_v2 = vsel %vm102_vm5, %v507_v44, %v509_v52  ;;  %v515_v53 = vsel %vm102_vm5, %v509_v52, %v511_v24 }
 0x23e   :  { %v521_v59 = vmax.f32 %v483_v50, %v513_v55  ;;  %v523_v60 = vmax.f32 %v485_v49, %v515_v53  ;;  %v520_v61 = vmax.f32 %v482_v56, %v512_v54  ;;  %v522_v62 = vmax.f32 %v484_v57, %v514_v2 }
 0x23f   :  { %v689_v24 = vrot.slane %v687_v22, 4  ;;  %v811_v52 = vperm.slane %v806_v42, 3  ;;  %v809_v2 = vperm.slane %v806_v42, 1  ;;  %v810_v53 = vperm.slane %v806_v42, 2 }
 0x240   :  { %v530_v58 = vrot.slane %v521_v59, 4  ;;  %v531_v3 = vrot.slane %v523_v60, 4  ;;  %vm1116_vm5 = vcmask 293888  }
 0x241   :  { %v813_v56 = vrot.slane %v811_v52, 4  ;;  %v812_v7 = vrot.slane %v809_v2, 4 }
 0x242   :  { %v1821_v63 = vsel %vm403_vm12, %v520_v61, %v530_v58  ;;  %v1824_v0 = vsel %vm403_vm12, %v522_v62, %v531_v3  ;;  %v852_v3 = vpop.permute.xlu2 %851 }
 0x243   :  { %536 = vst [vmem:[#allocation4 + $0x4] sm:$0xff] %v1821_v63 }
 0x244   :  { %537 = vst [vmem:[#allocation4 + $0xc] sm:$0xff] %v1824_v0  ;;  %v620_v15 = vpop.permute.xlu0 %619  ;;  %v685_v20 = vpop.permute.xlu1 %684 }
 0x245   :  { %v622_v19 = vrot.slane %v620_v15, 4  ;;  %v688_v25 = vrot.slane %v685_v20, 4 }
 0x247   :  { %v625_v21 = vsel %vm403_vm12, %v621_v16, %v622_v19  ;;  %v692_v35 = vsel %vm403_vm12, %v688_v25, %v689_v24  ;;  %v691_v43 = vsel %vm690_vm15, %v688_v25, %v685_v20  ;;  %v904_v25 = vld [vmem:[#allocation4 + $0x14] sm:$0xf] }
 0x248   :  { %v626_v23 = vsel %vm623_vm14, %v625_v21, %v620_v15  ;;  %v693_v38 = vsel %vm690_vm15, %v692_v35, %v687_v22 }
 0x24a   :  { %v1830_v9 = vld [vmem:[#allocation4] sm:$0xff] }
 0x24b   :  { %v1833_v12 = vld [vmem:[#allocation4 + $0x8] sm:$0xff]  ;;  %v540_v13 = vld [vmem:[#allocation4 + $0x10] sm:$0xf]  ;;  %v564_v14 = vmul.f32 %v558_v8, %v1830_v9  ;;  %v630_v34 = vmul.f32 %v624_v27, %v1830_v9  ;;  %v697_v50 = vmul.f32 %v691_v43, %v1830_v9 }
 0x24c   :  { %v565_v17 = vmul.f32 %v560_v11, %v1833_v12  ;;  %v566_v18 = vmul.f32 %v556_v4, %v540_v13  ;;  %v605_v26 = vld [vmem:[#allocation4 + $0x10] sm:$0xf]  ;;  %v631_v29 = vmul.f32 %v626_v23, %v1833_v12  ;;  %v753_v36 = vpop.permute.xlu1 %752  ;;  %v751_v37 = vpop.permute.xlu0 %750  ;;  %v698_v44 = vmul.f32 %v693_v38, %v1833_v12  ;;  %v839_v11 = vld [vmem:[#allocation4 + $0x14] sm:$0xf] }
 0x24d   :  { %570 = vst [vmem:[#allocation1] ss:$2 sm:$0xff] %v564_v14  ;;  %v632_v31 = vmul.f32 %v622_v19, %v605_v26  ;;  %v672_v39 = vld [vmem:[#allocation4 + $0x10] sm:$0xf]  ;;  %v755_v40 = vrot.slane %v753_v36, 4  ;;  %v754_v41 = vrot.slane %v751_v37, 4  ;;  %v815_v14 = vsel %vm403_vm12, %v810_v53, %v813_v56  ;;  %v919_v26 = vpop.permute.xlu2 %918 }
 0x24e   :  { %572 = vst [vmem:[#allocation1 + $0x10] ss:$2 sm:$0xff] %v565_v17  ;;  %v699_v45 = vmul.f32 %v689_v24, %v672_v39  ;;  %v738_v57 = vld [vmem:[#allocation4 + $0x10] sm:$0xf]  ;;  %v814_v17 = vsel %vm403_vm12, %v808_v6, %v812_v7  ;;  %v855_v19 = vrot.slane %v852_v3, 4 }
 0x24f   :  { %574 = vst [vmem:[#allocation1 + $0x20] ss:$2 sm:$0xff] %v566_v18  ;;  %v758_v48 = vsel %vm403_vm12, %v754_v41, %v755_v40  ;;  %v757_v59 = vsel %vm756_vm0, %v754_v41, %v751_v37  ;;  %v765_v61 = vmul.f32 %v755_v40, %v738_v57  ;;  %v819_v18 = vmul.f32 %v815_v14, %v1824_v0  ;;  %v968_v41 = vld [vmem:[#allocation4 + $0x14] sm:$0xf] }
 0x250   :  { %v759_v55 = vsel %vm756_vm0, %v758_v48, %v753_v36  ;;  %v763_v8 = vmul.f32 %v757_v59, %v1830_v9  ;;  %v818_v24 = vmul.f32 %v814_v17, %v1821_v63  ;;  %v857_v38 = vsel %vm790_vm1, %v855_v19, %v852_v3  ;;  %v1033_v57 = vld [vmem:[#allocation4 + $0x14] sm:$0xf] }
 0x251   :  { %v764_v60 = vmul.f32 %v759_v55, %v1833_v12 }
 0x254   :  { %v1843_v32 = vld.sshfl [vmem:[#allocation1] sm:$0xff pattern:$0x75316420]  ;;  %v1845_v33 = vld.sshfl [vmem:[#allocation1 + $0x8] sm:$0xff pattern:$0x75316420]  ;;  %v854_v4 = vpop.permute.xlu0 %853  ;;  %v917_v20 = vpop.permute.xlu1 %916 }
 0x255   :  { %v578_v28 = vld.sshfl [vmem:[#allocation1 + $0x18] sm:$0xff pattern:$0x75316420]  ;;  %v577_v10 = vld.sshfl [vmem:[#allocation1 + $0x10] sm:$0xff pattern:$0x75316420] }
 0x256   :  { %586 = vrot.lane.b32.xlu2 %v578_v28, %s1598_s12  ;;  %v579_v30 = vld.sshfl [vmem:[#allocation1 + $0x20] sm:$0xff pattern:$0x75316420]  ;;  %584 = vrot.lane.b32.xlu1 %v577_v10, %s1598_s12  ;;  %639 = vst [vmem:[#allocation1 + $0x11] ss:$2 sm:$0xff] %v631_v29  ;;  %v856_v15 = vrot.slane %v854_v4, 4 }
 0x257   :  { %641 = vst [vmem:[#allocation1 + $0x21] ss:$2 sm:$0xff] %v632_v31  ;;  %v921_v29 = vrot.slane %v919_v26, 4  ;;  %v920_v31 = vrot.slane %v917_v20, 4 }
 0x258   :  { %637 = vst [vmem:[#allocation1 + $0x1] ss:$2 sm:$0xff] %v630_v34  ;;  %v865_v16 = vmul.f32 %v856_v15, %v839_v11  ;;  %v858_v9 = vsel %vm403_vm12, %v855_v19, %v856_v15 }
 0x259   :  { %v859_v10 = vsel %vm790_vm1, %v858_v9, %v854_v4  ;;  %v923_v42 = vsel %vm403_vm12, %v920_v31, %v921_v29  ;;  %v922_v52 = vsel %vm723_vm2, %v920_v31, %v917_v20  ;;  %v1046_v4 = vpop.permute.xlu2 %1045 }
 0x25a   :  { %v864_v34 = vmul.f32 %v859_v10, %v1824_v0  ;;  %v928_v59 = vmul.f32 %v922_v52, %v1821_v63 }
 0x25c   :  { %v981_v35 = vpop.permute.xlu0 %980  ;;  %v983_v39 = vpop.permute.xlu1 %982 }
 0x25d   :  { %v645_v46 = vld.sshfl [vmem:[#allocation1 + $0x18] sm:$0xff pattern:$0x75316420]  ;;  %v644_v47 = vld.sshfl [vmem:[#allocation1 + $0x10] sm:$0xff pattern:$0x75316420] }
 0x25e   :  { %588 = vrot.lane.b32.xlu2 %v579_v30, %s1598_s12  ;;  %v646_v49 = vld.sshfl [vmem:[#allocation1 + $0x20] sm:$0xff pattern:$0x75316420]  ;;  %653 = vrot.lane.b32.xlu1 %v645_v46, %s1579_s26  ;;  %705 = vst [vmem:[#allocation1 + $0x10] ss:$2 sm:$0xff] %v698_v44  ;;  %v930_v30 = vmul.f32 %v921_v29, %v904_v25  ;;  %v985_v46 = vrot.slane %v983_v39, 4 }
 0x25f   :  { %651 = vrot.lane.b32.xlu0 %v644_v47, %s1579_s26  ;;  %707 = vst [vmem:[#allocation1 + $0x20] ss:$2 sm:$0xff] %v699_v45  ;;  %v1857_v51 = vld.sshfl [vmem:[#allocation1] sm:$0xff pattern:$0x75316420]  ;;  %v863_v45 = vmul.f32 %v857_v38, %v1821_v63  ;;  %v924_v47 = vsel %vm723_vm2, %v923_v42, %v919_v26 }
 0x260   :  { %v1859_v54 = vld.sshfl [vmem:[#allocation1 + $0x8] sm:$0xff pattern:$0x75316420]  ;;  %v994_v48 = vmul.f32 %v985_v46, %v968_v41  ;;  %v929_v55 = vmul.f32 %v924_v47, %v1824_v0 }
 0x261   :  { %703 = vst [vmem:[#allocation1] ss:$2 sm:$0xff] %v697_v50 }
 0x264   :  { %v1048_v2 = vpop.permute.xlu0 %1047 }
 0x265   :  { %v711_v58 = vld.sshfl [vmem:[#allocation1 + $0x18] sm:$0xff pattern:$0x75316420]  ;;  %v710_v62 = vld.sshfl [vmem:[#allocation1 + $0x10] sm:$0xff pattern:$0x75316420] }
 0x266   :  { %v712_v5 = vld.sshfl [vmem:[#allocation1 + $0x20] sm:$0xff pattern:$0x75316420]  ;;  %719 = vrot.lane.b32.xlu1 %v711_v58, %s1597_s30  ;;  %772 = vst [vmem:[#allocation1 + $0x11] ss:$2 sm:$0xff] %v764_v60 }
 0x267   :  { %655 = vrot.lane.b32.xlu0 %v646_v49, %s1579_s26  ;;  %721 = vrot.lane.b32.xlu2 %v712_v5, %s1597_s30  ;;  %774 = vst [vmem:[#allocation1 + $0x21] ss:$2 sm:$0xff] %v765_v61  ;;  %v984_v49 = vrot.slane %v981_v35, 4  ;;  %v1050_v61 = vrot.slane %v1048_v2, 4 }
 0x268   :  { %v709_v12 = vld.sshfl [vmem:[#allocation1 + $0x8] sm:$0xff pattern:$0x75316420]  ;;  %v708_v13 = vld.sshfl [vmem:[#allocation1] sm:$0xff pattern:$0x75316420] }
 0x269   :  { %770 = vst [vmem:[#allocation1 + $0x1] ss:$2 sm:$0xff] %v763_v8  ;;  %v987_v60 = vsel %vm403_vm12, %v984_v49, %v985_v46  ;;  %v1059_v3 = vmul.f32 %v1050_v61, %v1033_v57  ;;  %v986_v6 = vsel %vm657_vm3, %v984_v49, %v981_v35  ;;  %v1049_v8 = vrot.slane %v1046_v4, 4 }
 0x26a   :  { %v988_v5 = vsel %vm657_vm3, %v987_v60, %v983_v39  ;;  %v992_v14 = vmul.f32 %v986_v6, %v1821_v63 }
 0x26b   :  { %v993_v11 = vmul.f32 %v988_v5, %v1824_v0  ;;  %v1052_v15 = vsel %vm403_vm12, %v1049_v8, %v1050_v61  ;;  %v1051_v19 = vsel %vm590_vm4, %v1049_v8, %v1046_v4 }
 0x26c   :  { %v1057_v9 = vmul.f32 %v1051_v19, %v1821_v63 }
 0x26d   :  { %v777_v21 = vld.sshfl [vmem:[#allocation1 + $0x10] sm:$0xff pattern:$0x75316420]  ;;  %v778_v22 = vld.sshfl [vmem:[#allocation1 + $0x18] sm:$0xff pattern:$0x75316420] }
 0x26e   :  { %v1872_v23 = vld.sshfl [vmem:[#allocation1 + $0x20] sm:$0xff pattern:$0x75316420]  ;;  %715 = vrot.lane.b32.xlu1 %v709_v12, %s1597_s30  ;;  %824 = vst [vmem:[#allocation1 + $0x10] ss:$2 sm:$0xff] %v819_v18  ;;  %v1053_v18 = vsel %vm590_vm4, %v1052_v15, %v1048_v2 }
 0x26f   :  { %717 = vrot.lane.b32.xlu0 %v710_v62, %s1597_s30  ;;  %874 = vst [vmem:[#allocation1 + $0x21] ss:$2 sm:$0xff] %v865_v16  ;;  %784 = vrot.lane.b32.xlu2 %v777_v21, %s1596_s29  ;;  %v1058_v20 = vmul.f32 %v1053_v18, %v1824_v0 }
 0x270   :  { %v1878_v27 = vld.sshfl [vmem:[#allocation1 + $0x8] sm:$0xff pattern:$0x75316420]  ;;  %v775_v28 = vld.sshfl [vmem:[#allocation1] sm:$0xff pattern:$0x75316420] }
 0x271   :  { %822 = vst [vmem:[#allocation1] ss:$2 sm:$0xff] %v818_v24 }
 0x275   :  { %v827_v36 = vld.sshfl [vmem:[#allocation1 + $0x10] sm:$0xff pattern:$0x75316420]  ;;  %v828_v37 = vld.sshfl [vmem:[#allocation1 + $0x18] sm:$0xff pattern:$0x75316420] }
 0x276   :  { %v879_v40 = vld.sshfl [vmem:[#allocation1 + $0x20] sm:$0xff pattern:$0x75316420]  ;;  %872 = vst [vmem:[#allocation1 + $0x11] ss:$2 sm:$0xff] %v864_v34 }
 0x277   :  { %713 = vrot.lane.b32.xlu0 %v708_v13, %s1597_s30  ;;  %780 = vrot.lane.b32.xlu2 %v775_v28, %s1596_s29  ;;  %938 = vst [vmem:[#allocation1 + $0x20] ss:$2 sm:$0xff] %v930_v30  ;;  %v1212_v30 = vld [vmem:[%s2049_s7] sm:$0xff] }
 0x278   :  { %888 = vrot.lane.b32.xlu1 %v879_v40, %s1595_s28  ;;  %v825_v43 = vld.sshfl [vmem:[#allocation1] sm:$0xff pattern:$0x75316420]  ;;  %v826_v44 = vld.sshfl [vmem:[#allocation1 + $0x8] sm:$0xff pattern:$0x75316420] }
 0x279   :  { %833 = vst [vmem:[#allocation7 + $0x8] sm:$0xf] %v825_v43 }
 0x27a   :  { %834 = vst [vmem:[#allocation7 + $0x88] sm:$0xf] %v826_v44 }
 0x27b   :  { %870 = vst [vmem:[#allocation1 + $0x1] ss:$2 sm:$0xff] %v863_v45 }
 0x27c   :  { %835 = vst [vmem:[#allocation7 + $0x28] sm:$0xf] %v827_v36 }
 0x27d   :  { %v878_v50 = vld.sshfl [vmem:[#allocation1 + $0x18] sm:$0xff pattern:$0x75316420]  ;;  %836 = vst [vmem:[#allocation7 + $0x40] sm:$0xf] %v828_v37 }
 0x27e   :  { %v943_v53 = vld.sshfl [vmem:[#allocation1 + $0x20] sm:$0xff pattern:$0x75316420]  ;;  %v877_v56 = vld.sshfl [vmem:[#allocation1 + $0x10] sm:$0xff pattern:$0x75316420] }
 0x27f   :  { %786 = vrot.lane.b32.xlu0 %v778_v22, %s1596_s29  ;;  %1003 = vst [vmem:[#allocation1 + $0x21] ss:$2 sm:$0xff] %v994_v48  ;;  %884 = vrot.lane.b32.xlu2 %v877_v56, %s1595_s28 }
 0x280   :  { %952 = vrot.lane.b32.xlu1 %v943_v53, %s1594_s27  ;;  %936 = vst [vmem:[#allocation1 + $0x10] ss:$2 sm:$0xff] %v929_v55 }
 0x282   :  { %v875_v58 = vld.sshfl [vmem:[#allocation1] sm:$0xff pattern:$0x75316420]  ;;  %v876_v62 = vld.sshfl [vmem:[#allocation1 + $0x8] sm:$0xff pattern:$0x75316420] }
 0x283   :  { %934 = vst [vmem:[#allocation1] ss:$2 sm:$0xff] %v928_v59 }
 0x286   :  { %v1008_v7 = vld.sshfl [vmem:[#allocation1 + $0x20] sm:$0xff pattern:$0x75316420] }
 0x287   :  { %788 = vrot.lane.b32.xlu0 %v1872_v23, %s1596_s29  ;;  %882 = vrot.lane.b32.xlu2 %v876_v62, %s1595_s28  ;;  %1067 = vst [vmem:[#allocation1 + $0x20] ss:$2 sm:$0xff] %v1059_v3  ;;  %v942_v12 = vld.sshfl [vmem:[#allocation1 + $0x18] sm:$0xff pattern:$0x75316420] }
 0x288   :  { %880 = vrot.lane.b32.xlu1 %v875_v58, %s1595_s28  ;;  %v941_v13 = vld.sshfl [vmem:[#allocation1 + $0x10] sm:$0xff pattern:$0x75316420] }
 0x289   :  { %1001 = vst [vmem:[#allocation1 + $0x11] ss:$2 sm:$0xff] %v993_v11 }
 0x28a   :  { %v940_v16 = vld.sshfl [vmem:[#allocation1 + $0x8] sm:$0xff pattern:$0x75316420]  ;;  %v939_v17 = vld.sshfl [vmem:[#allocation1] sm:$0xff pattern:$0x75316420] }
 0x28b   :  { %999 = vst [vmem:[#allocation1 + $0x1] ss:$2 sm:$0xff] %v992_v14 }
 0x28e   :  { %v1072_v0 = vld.sshfl [vmem:[#allocation1 + $0x20] sm:$0xff pattern:$0x75316420] }
 0x28f   :  { %782 = vrot.lane.b32.xlu0 %v1878_v27, %s1596_s29  ;;  %1017 = vrot.lane.b32.xlu2 %v1008_v7, %s1593_s25 }
 0x290   :  { %950 = vrot.lane.b32.xlu1 %v942_v12, %s1594_s27  ;;  %v1006_v21 = vld.sshfl [vmem:[#allocation1 + $0x10] sm:$0xff pattern:$0x75316420]  ;;  %v1007_v22 = vld.sshfl [vmem:[#allocation1 + $0x18] sm:$0xff pattern:$0x75316420] }
 0x291   :  { %1065 = vst [vmem:[#allocation1 + $0x10] ss:$2 sm:$0xff] %v1058_v20 }
 0x292   :  { %v1005_v23 = vld.sshfl [vmem:[#allocation1 + $0x8] sm:$0xff pattern:$0x75316420]  ;;  %v1004_v24 = vld.sshfl [vmem:[#allocation1] sm:$0xff pattern:$0x75316420] }
 0x293   :  { %1063 = vst [vmem:[#allocation1] ss:$2 sm:$0xff] %v1057_v9 }
 0x297   :  { %886 = vrot.lane.b32.xlu0 %v878_v50, %s1595_s28  ;;  %946 = vrot.lane.b32.xlu2 %v940_v16, %s1594_s27 }
 0x298   :  { %944 = vrot.lane.b32.xlu1 %v939_v17, %s1594_s27  ;;  %v1071_v63 = vld.sshfl [vmem:[#allocation1 + $0x18] sm:$0xff pattern:$0x75316420]  ;;  %v1070_v26 = vld.sshfl [vmem:[#allocation1 + $0x10] sm:$0xff pattern:$0x75316420] }
 0x29a   :  { %v1068_v25 = vld.sshfl [vmem:[#allocation1] sm:$0xff pattern:$0x75316420]  ;;  %v1069_v28 = vld.sshfl [vmem:[#allocation1 + $0x8] sm:$0xff pattern:$0x75316420] }
 0x29f   :  { %948 = vrot.lane.b32.xlu0 %v941_v13, %s1594_s27  ;;  %1013 = vrot.lane.b32.xlu2 %v1006_v21, %s1593_s25 }
 0x2a0   :  { %1081 = vrot.lane.b32.xlu1 %v1072_v0, %s1592_s1 }
 0x2a7   :  { %1015 = vrot.lane.b32.xlu0 %v1007_v22, %s1593_s25  ;;  %1079 = vrot.lane.b32.xlu2 %v1071_v63, %s1592_s1 }
 0x2a8   :  { %1011 = vrot.lane.b32.xlu1 %v1005_v23, %s1593_s25 }
 0x2af   :  { %1009 = vrot.lane.b32.xlu0 %v1004_v24, %s1593_s25  ;;  %1073 = vrot.lane.b32.xlu2 %v1068_v25, %s1592_s1 }
 0x2b0   :  { %v587_v27 = vpop.permute.xlu2 %586  ;;  %1077 = vrot.lane.b32.xlu1 %v1070_v26, %s1592_s1  ;;  %v1222_v26 = vld [vmem:[%s2050_s8] sm:$0xff] }
 0x2b7   :  { %1075 = vrot.lane.b32.xlu0 %v1069_v28, %s1592_s1  ;;  %582 = vrot.lane.b32.xlu2 %v1845_v33, %s1598_s12 }
 0x2b8   :  { %v589_v29 = vpop.permute.xlu2 %588  ;;  %580 = vrot.lane.b32.xlu1 %v1843_v32, %s1598_s12 }
 0x2b9   :  { %v594_v10 = vsel %vm590_vm4, %v587_v27, %v589_v29 }
 0x2ba   :  { %602 = vst [vmem:[#allocation7 + $0x18] sm:$0xf] %v594_v10 }
 0x2bf   :  { %647 = vrot.lane.b32.xlu0 %v1857_v51, %s1579_s26  ;;  %1215 = vperm.xlu2 %1473, %v1212_v30  }
 0x2c0   :  { %649 = vrot.lane.b32.xlu1 %v1859_v54, %s1579_s26 }
 0x2c1   :  { %v722_v31 = vpop.permute.xlu2 %721 }
 0x2c7   :  { %1225 = vperm.xlu0 %1474, %v1222_v26  }
 0x2c8   :  { %v1938_v34 = vpop.permute.xlu1 %584 }
 0x2c9   :  { %v593_v32 = vsel %vm590_vm4, %v1938_v34, %v587_v27  ;;  %v785_v33 = vpop.permute.xlu2 %784 }
 0x2ca   :  { %601 = vst [vmem:[#allocation7 + $0x50] sm:$0xf] %v593_v32 }
 0x2cf   :  { %1264 = vrot.lane.b32.xlu0 %v1582_v1, %s1595_s28 }
 0x2d0   :  { %v654_v35 = vpop.permute.xlu1 %653 }
 0x2d1   :  { %v1942_v36 = vpop.permute.xlu0 %651  ;;  %v781_v37 = vpop.permute.xlu2 %780 }
 0x2d2   :  { %v660_v38 = vsel %vm657_vm3, %v1942_v36, %v654_v35 }
 0x2d3   :  { %668 = vst [vmem:[#allocation7 + $0x50] sm:$0xf0] %v660_v38 }
 0x2d8   :  { %v720_v51 = vpop.permute.xlu1 %719 }
 0x2d9   :  { %v656_v39 = vpop.permute.xlu0 %655  ;;  %v727_v54 = vsel %vm723_vm2, %v720_v51, %v722_v31  ;;  %v885_v40 = vpop.permute.xlu2 %884 }
 0x2da   :  { %v661_v41 = vsel %vm657_vm3, %v654_v35, %v656_v39  ;;  %735 = vst [vmem:[#allocation7 + $0x80] sm:$0xf] %v727_v54 }
 0x2db   :  { %669 = vst [vmem:[#allocation7 + $0x18] sm:$0xf0] %v661_v41 }
 0x2e0   :  { %v716_v42 = vpop.permute.xlu1 %715 }
 0x2e1   :  { %v718_v43 = vpop.permute.xlu0 %717  ;;  %v883_v44 = vpop.permute.xlu2 %882 }
 0x2e2   :  { %v725_v45 = vsel %vm723_vm2, %v716_v42, %v718_v43  ;;  %v726_v46 = vsel %vm723_vm2, %v718_v43, %v720_v51  ;;  %v891_v47 = vsel %vm756_vm0, %v883_v44, %v885_v40 }
 0x2e3   :  { %733 = vst [vmem:[#allocation7 + $0x68] sm:$0xf] %v725_v45 }
 0x2e4   :  { %899 = vst [vmem:[#allocation7 + $0x88] sm:$0xf0] %v891_v47 }
 0x2e5   :  { %734 = vst [vmem:[#allocation7 + $0x78] sm:$0xf] %v726_v46 }
 0x2e9   :  { %v714_v48 = vpop.permute.xlu0 %713  ;;  %v1018_v50 = vpop.permute.xlu2 %1017 }
 0x2ea   :  { %v889_v49 = vpop.permute.xlu1 %888  ;;  %v724_v52 = vsel %vm723_vm2, %v714_v48, %v716_v42  ;;  %v1098_v48 = vld [vmem:[#allocation7 + $0x50] sm:$0xff] }
 0x2eb   :  { %732 = vst [vmem:[#allocation7 + $0x30] sm:$0xf] %v724_v52 }
 0x2f1   :  { %v787_v55 = vpop.permute.xlu0 %786  ;;  %v947_v53 = vpop.permute.xlu2 %946 }
 0x2f2   :  { %v953_v2 = vpop.permute.xlu1 %952  ;;  %v793_v56 = vsel %vm790_vm1, %v785_v33, %v787_v55 }
 0x2f3   :  { %801 = vst [vmem:[#allocation7 + $0x78] sm:$0xf0] %v793_v56 }
 0x2f9   :  { %v789_v57 = vpop.permute.xlu0 %788  ;;  %v1014_v60 = vpop.permute.xlu2 %1013 }
 0x2fa   :  { %v881_v59 = vpop.permute.xlu1 %880  ;;  %v794_v61 = vsel %vm790_vm1, %v787_v55, %v789_v57  ;;  %v1102_v42 = vld [vmem:[#allocation7 + $0x78] sm:$0xff] }
 0x2fb   :  { %v890_v58 = vsel %vm756_vm0, %v881_v59, %v883_v44  ;;  %802 = vst [vmem:[#allocation7 + $0x80] sm:$0xf0] %v794_v61 }
 0x2fc   :  { %898 = vst [vmem:[#allocation7 + $0x8] sm:$0xf0] %v890_v58 }
 0x301   :  { %v783_v62 = vpop.permute.xlu0 %782  ;;  %v1080_v4 = vpop.permute.xlu2 %1079 }
 0x302   :  { %v951_v3 = vpop.permute.xlu1 %950  ;;  %v791_v5 = vsel %vm790_vm1, %v781_v37, %v783_v62  ;;  %v792_v6 = vsel %vm790_vm1, %v783_v62, %v785_v33  ;;  %v1095_v33 = vld [vmem:[%s2047_s5] sm:$0xff]  ;;  %v1099_v37 = vld [vmem:[#allocation7 + $0x18] sm:$0xff] }
 0x303   :  { %v957_v7 = vsel %vm690_vm15, %v951_v3, %v953_v2  ;;  %799 = vst [vmem:[#allocation7 + $0x30] sm:$0xf0] %v791_v5  ;;  %v1104_v55 = vld [vmem:[#allocation7 + $0x8] sm:$0xff] }
 0x304   :  { %965 = vst [vmem:[#allocation7 + $0x60] sm:$0xf] %v957_v7 }
 0x305   :  { %800 = vst [vmem:[#allocation7 + $0x68] sm:$0xf0] %v792_v6 }
 0x309   :  { %v887_v8 = vpop.permute.xlu0 %886  ;;  %v1074_v12 = vpop.permute.xlu2 %1073 }
 0x30a   :  { %v945_v11 = vpop.permute.xlu1 %944  ;;  %v892_v13 = vsel %vm756_vm0, %v885_v40, %v887_v8  ;;  %v893_v14 = vsel %vm756_vm0, %v887_v8, %v889_v49  ;;  %v1100_v2 = vld [vmem:[#allocation7 + $0x30] sm:$0xff] }
 0x30b   :  { %v954_v15 = vsel %vm690_vm15, %v945_v11, %v947_v53  ;;  %900 = vst [vmem:[#allocation7 + $0x28] sm:$0xf0] %v892_v13 }
 0x30c   :  { %962 = vst [vmem:[#allocation7 + $0x58] sm:$0xf] %v954_v15 }
 0x30d   :  { %901 = vst [vmem:[#allocation7 + $0x40] sm:$0xf0] %v893_v14 }
 0x311   :  { %v949_v16 = vpop.permute.xlu0 %948  ;;  %v583_v18 = vpop.permute.xlu2 %582 }
 0x312   :  { %v1082_v17 = vpop.permute.xlu1 %1081  ;;  %v955_v19 = vsel %vm690_vm15, %v947_v53, %v949_v16  ;;  %v592_v21 = vsel %vm590_vm4, %v583_v18, %v1938_v34  ;;  %v956_v22 = vsel %vm690_vm15, %v949_v16, %v951_v3  ;;  %v1103_v34 = vld [vmem:[#allocation7 + $0x80] sm:$0xff]  ;;  %v1106_v41 = vld [vmem:[#allocation7 + $0x28] sm:$0xff] }
 0x313   :  { %v1086_v20 = vsel %vm557_vm13, %v1080_v4, %v1082_v17  ;;  %963 = vst [vmem:[#allocation7 + $0x10] sm:$0xf] %v955_v19  ;;  %v1101_v53 = vld [vmem:[#allocation7 + $0x68] sm:$0xff] }
 0x314   :  { %1094 = vst [vmem:[#allocation7 + $0x90] sm:$0xf] %v1086_v20  ;;  %v1107_v31 = vld [vmem:[#allocation7 + $0x40] sm:$0xff] }
 0x315   :  { %600 = vst [vmem:[#allocation7 + $0x38] sm:$0xf] %v592_v21 }
 0x316   :  { %964 = vst [vmem:[#allocation7 + $0x98] sm:$0xf] %v956_v22 }
 0x319   :  { %v1016_v9 = vpop.permute.xlu0 %1015  ;;  %v1216_v59 = vpop.permute.xlu2 %1215 }
 0x31a   :  { %v1012_v23 = vpop.permute.xlu1 %1011  ;;  %v1021_v24 = vsel %vm623_vm14, %v1014_v60, %v1016_v9  ;;  %v1022_v0 = vsel %vm623_vm14, %v1016_v9, %v1018_v50 }
 0x31b   :  { %v1020_v63 = vsel %vm623_vm14, %v1012_v23, %v1014_v60  ;;  %1029 = vst [vmem:[#allocation7 + $0x98] sm:$0xf0] %v1021_v24  ;;  %v1115_v25 = vld [vmem:[#allocation7 + $0x90] sm:$0xf] }
 0x31c   :  { %1028 = vst [vmem:[#allocation7 + $0x10] sm:$0xf0] %v1020_v63  ;;  %1447 = vmatpush.msk.msrb.mxu3 %vm403_vm12, %v1115_v25 }
 0x31d   :  { %1030 = vst [vmem:[#allocation7 + $0x60] sm:$0xf0] %v1022_v0 }
 0x321   :  { %v1010_v27 = vpop.permute.xlu0 %1009 }
 0x322   :  { %v1078_v28 = vpop.permute.xlu1 %1077  ;;  %v1019_v29 = vsel %vm623_vm14, %v1010_v27, %v1012_v23  ;;  %v1110_v40 = vld [vmem:[#allocation7 + $0x98] sm:$0xff] }
 0x323   :  { %v1085_v10 = vsel %vm557_vm13, %v1078_v28, %v1080_v4  ;;  %1027 = vst [vmem:[#allocation7 + $0x58] sm:$0xf0] %v1019_v29  ;;  %v1109_v52 = vld [vmem:[#allocation7 + $0x10] sm:$0xff] }
 0x324   :  { %1093 = vst [vmem:[#allocation7 + $0x70] sm:$0xf] %v1085_v10  ;;  %v1111_v30 = vld [vmem:[#allocation7 + $0x60] sm:$0xff] }
 0x325   :  { %1204 = vmatpush.msrb.mxu3 %v1111_v30 }
 0x327   :  { %1205 = vmatpush.msrb.mxu3 %v1107_v31 }
 0x329   :  { %1206 = vmatpush.msrb.mxu3 %v1103_v34  ;;  %v1076_v32 = vpop.permute.xlu0 %1075 }
 0x32a   :  { %v581_v35 = vpop.permute.xlu1 %580  ;;  %v1083_v38 = vsel %vm557_vm13, %v1074_v12, %v1076_v32  ;;  %v1084_v51 = vsel %vm557_vm13, %v1076_v32, %v1078_v28  ;;  %v1108_v50 = vld [vmem:[#allocation7 + $0x58] sm:$0xff] }
 0x32b   :  { %v591_v39 = vsel %vm590_vm4, %v581_v35, %v583_v18  ;;  %1207 = vmatpush.msrb.mxu3 %v1099_v37  ;;  %1091 = vst [vmem:[#allocation7 + $0x20] sm:$0xf] %v1083_v38  ;;  %v1114_v54 = vld [vmem:[#allocation7 + $0x70] sm:$0xf] }
 0x32c   :  { %599 = vst [vmem:[#allocation7] sm:$0xf] %v591_v39  ;;  %1448 = vmatmul.msk.f32.vlgmr.msrb.gmra.mxu3 %vm1116_vm5, %v1095_v33  ;;  %1445 = vmatpush.msk.msrb.mxu2 %vm403_vm12, %v1114_v54 }
 0x32d   :  { %1092 = vst [vmem:[#allocation7 + $0x48] sm:$0xf] %v1084_v51 }
 0x32e   :  { %1184 = vmatpush.msrb.mxu2 %v1110_v40 }
 0x330   :  { %1185 = vmatpush.msrb.mxu2 %v1106_v41 }
 0x331   :  { %v648_v43 = vpop.permute.xlu0 %647 }
 0x332   :  { %v650_v44 = vpop.permute.xlu1 %649  ;;  %1186 = vmatpush.msrb.mxu2 %v1102_v42  ;;  %v1112_v45 = vld [vmem:[#allocation7 + $0x20] sm:$0xf] }
 0x333   :  { %v659_v46 = vsel %vm657_vm3, %v650_v44, %v1942_v36  ;;  %v658_v47 = vsel %vm657_vm3, %v648_v43, %v650_v44  ;;  %1441 = vmatpush.msk.msrb.mxu0 %vm403_vm12, %v1112_v45  ;;  %v1105_v36 = vld [vmem:[#allocation7 + $0x88] sm:$0xff]  ;;  %v1370_v43 = vld [vmem:[#allocation13 + $0x40] sm:$0xff] }
 0x334   :  { %667 = vst [vmem:[#allocation7 + $0x38] sm:$0xf0] %v659_v46  ;;  %v1113_v49 = vld [vmem:[#allocation7 + $0x48] sm:$0xf]  ;;  %1187 = vmatpush.msrb.mxu2 %v1098_v48 }
 0x335   :  { %666 = vst [vmem:[#allocation7] sm:$0xf0] %v658_v47  ;;  %1443 = vmatpush.msk.msrb.mxu1 %vm403_vm12, %v1113_v49  ;;  %1446 = vmatmul.msk.f32.vlgmr.msrb.gmra.mxu2 %vm1116_vm5, %v1095_v33  ;;  %v1371_v44 = vld [vmem:[#allocation13 + $0x48] sm:$0xff]  ;;  %v1346_v49 = vld [vmem:[#allocation13 + $0x20] sm:$0xff] }
 0x336   :  { %1144 = vmatpush.msrb.mxu0 %v1108_v50  ;;  %v1347_v45 = vld [vmem:[#allocation13 + $0x28] sm:$0xff] }
 0x337   :  { %1164 = vmatpush.msrb.mxu1 %v1109_v52  ;;  %v1323_v50 = vld [vmem:[#allocation13 + $0x8] sm:$0xff] }
 0x338   :  { %1145 = vmatpush.msrb.mxu0 %v1104_v55 }
 0x339   :  { %1165 = vmatpush.msrb.mxu1 %v1105_v36  ;;  %v1226_v3 = vpop.permute.xlu0 %1225  ;;  %v1322_v36 = vld [vmem:[#allocation13] sm:$0xff] }
 0x33a   :  { %1146 = vmatpush.msrb.mxu0 %v1100_v2 }
 0x33b   :  { %1166 = vmatpush.msrb.mxu1 %v1101_v53  ;;  %v1097_v56 = vld [vmem:[#allocation7 + $0x38] sm:$0xff] }
 0x33c   :  { %v1096_v57 = vld [vmem:[#allocation7] sm:$0xff] }
 0x33d   :  { %1147 = vmatpush.msrb.mxu0 %v1096_v57  ;;  %1167 = vmatpush.msrb.mxu1 %v1097_v56 }
 0x33e   :  { %1442 = vmatmul.msk.f32.vlgmr.msrb.gmra.mxu0 %vm1116_vm5, %v1095_v33  ;;  %1444 = vmatmul.msk.f32.vlgmr.msrb.gmra.mxu1 %vm1116_vm5, %v1095_v33 }
 0x341   :  { %v1265_v23 = vpop.permute.xlu0 %1264 }
 0x3af   :  { %v1209_v12 = vpop.f32.mrf.mxu3 }
 0x3b0   :  { %v1221_v14 = vmul.f32 %v1216_v59, %v1209_v12 }
 0x3b2   :  { %v1231_v16 = vadd.f32 %v1226_v3, %v1221_v14  ;;  %v1373_v14 = vld [vmem:[#allocation13 + $0x58] sm:$0xff] }
 0x3b4   :  { %v1235_v18 = vmul.f32 0.01, %v1231_v16 }
 0x3b6   :  { %v1999_v20 = vmax.f32 %v1231_v16, %v1235_v18  ;;  %v1349_v16 = vld [vmem:[#allocation13 + $0x38] sm:$0xff] }
 0x3b7   :  { %v1325_v18 = vld [vmem:[#allocation13 + $0x18] sm:$0xff] }
 0x3b8   :  { %v1189_v13 = vpop.f32.mrf.mxu2 }
 0x3b9   :  { %v1220_v15 = vmul.f32 %v1216_v59, %v1189_v13 }
 0x3bb   :  { %v1149_v60 = vpop.f32.mrf.mxu0  ;;  %v1169_v61 = vpop.f32.mrf.mxu1  ;;  %v1230_v17 = vadd.f32 %v1226_v3, %v1220_v15 }
 0x3bc   :  { %v1218_v58 = vmul.f32 %v1216_v59, %v1149_v60  ;;  %v1219_v62 = vmul.f32 %v1216_v59, %v1169_v61 }
 0x3bd   :  { %v1234_v19 = vmul.f32 0.01, %v1230_v17 }
 0x3be   :  { %v1228_v4 = vadd.f32 %v1226_v3, %v1218_v58  ;;  %v1229_v5 = vadd.f32 %v1226_v3, %v1219_v62  ;;  %v1372_v62 = vld [vmem:[#allocation13 + $0x50] sm:$0xff] }
 0x3bf   :  { %v1238_v21 = vmax.f32 %v1230_v17, %v1234_v19  ;;  %v1348_v3 = vld [vmem:[#allocation13 + $0x30] sm:$0xff] }
 0x3c0   :  { %v1232_v6 = vmul.f32 0.01, %v1228_v4  ;;  %v1233_v7 = vmul.f32 0.01, %v1229_v5 }
 0x3c2   :  { %v1236_v8 = vmax.f32 %v1228_v4, %v1232_v6  ;;  %v1237_v11 = vmax.f32 %v1229_v5, %v1233_v7  ;;  %v1324_v7 = vld [vmem:[#allocation13 + $0x10] sm:$0xff] }
 0x3c4   :  { %1258 = vrot.lane.b32.xlu2 %v1237_v11, %s1595_s28  ;;  %1278 = vrot.lane.b32.xlu0 %v1236_v8, %s1593_s25 }
 0x3c5   :  { %1256 = vrot.lane.b32.xlu1 %v1236_v8, %s1595_s28 }
 0x3cc   :  { %1300 = vrot.lane.b32.xlu2 %v1236_v8, %s1592_s1  ;;  %1302 = vrot.lane.b32.xlu0 %v1237_v11, %s1592_s1 }
 0x3cd   :  { %1280 = vrot.lane.b32.xlu1 %v1237_v11, %s1593_s25 }
 0x3d4   :  { %1262 = vrot.lane.b32.xlu2 %v1999_v20, %s1595_s28  ;;  %1306 = vrot.lane.b32.xlu0 %v1999_v20, %s1592_s1 }
 0x3d5   :  { %1260 = vrot.lane.b32.xlu1 %v1238_v21, %s1595_s28 }
 0x3dc   :  { %1282 = vrot.lane.b32.xlu2 %v1238_v21, %s1593_s25 }
 0x3dd   :  { %1284 = vrot.lane.b32.xlu1 %v1999_v20, %s1593_s25 }
 0x3e4   :  { %1286 = vrot.lane.b32.xlu2 %v1582_v1, %s1593_s25 }
 0x3e5   :  { %1304 = vrot.lane.b32.xlu1 %v1238_v21, %s1592_s1 }
 0x3ed   :  { %1308 = vrot.lane.b32.xlu1 %v1582_v1, %s1592_s1 }
 0x41e   :  { %v1259_v22 = vpop.permute.xlu2 %1258 }
 0x426   :  { %v1301_v24 = vpop.permute.xlu2 %1300 }
 0x42e   :  { %v1263_v25 = vpop.permute.xlu2 %1262 }
 0x42f   :  { %v1269_v52 = vsel %vm756_vm0, %v1263_v25, %v1265_v23 }
 0x430   :  { %v1277_v58 = vmax.f32 %v1999_v20, %v1269_v52 }
 0x436   :  { %v1279_v63 = vpop.permute.xlu0 %1278  ;;  %v1283_v31 = vpop.permute.xlu2 %1282 }
 0x437   :  { %v1257_v9 = vpop.permute.xlu1 %1256 }
 0x438   :  { %v1266_v27 = vsel %vm756_vm0, %v1257_v9, %v1259_v22 }
 0x439   :  { %v1274_v34 = vmax.f32 %v1236_v8, %v1266_v27 }
 0x43e   :  { %v1303_v28 = vpop.permute.xlu0 %1302  ;;  %v1287_v46 = vpop.permute.xlu2 %1286 }
 0x43f   :  { %v1281_v0 = vpop.permute.xlu1 %1280  ;;  %v1310_v37 = vsel %vm557_vm13, %v1301_v24, %v1303_v28 }
 0x440   :  { %v1288_v10 = vsel %vm623_vm14, %v1279_v63, %v1281_v0  ;;  %v1289_v35 = vsel %vm623_vm14, %v1281_v0, %v1283_v31 }
 0x441   :  { %v1296_v32 = vmax.f32 %v1274_v34, %v1288_v10 }
 0x443   :  { %v1318_v38 = vmax.f32 %v1296_v32, %v1310_v37 }
 0x445   :  { %v1374_v2 = vmul.f32 %v1370_v43, %v1318_v38  ;;  %v1350_v60 = vmul.f32 %v1346_v49, %v1318_v38  ;;  %v1326_v4 = vmul.f32 %v1322_v36, %v1318_v38  ;;  %v1389_v36 = vld [vmem:[%s2052_s10] sm:$0x1] }
 0x446   :  { %v1307_v41 = vpop.permute.xlu0 %1306 }
 0x447   :  { %v1261_v26 = vpop.permute.xlu1 %1260 }
 0x448   :  { %v1267_v30 = vsel %vm756_vm0, %v1259_v22, %v1261_v26  ;;  %v1268_v33 = vsel %vm756_vm0, %v1261_v26, %v1263_v25  ;;  %v1394_v22 = vld [vmem:[#allocation13 + $0x68] sm:$0xff]  ;;  %v1393_v25 = vld [vmem:[#allocation13 + $0x60] sm:$0xff] }
 0x449   :  { %v1275_v1 = vmax.f32 %v1237_v11, %v1267_v30  ;;  %v1276_v40 = vmax.f32 %v1238_v21, %v1268_v33  ;;  %v1397_v10 = vmul.f32 %v1393_v25, %v1318_v38  ;;  %v1395_v30 = vld [vmem:[#allocation13 + $0x70] sm:$0xff] }
 0x44b   :  { %v1297_v39 = vmax.f32 %v1275_v1, %v1289_v35 }
 0x44f   :  { %v1285_v29 = vpop.permute.xlu1 %1284 }
 0x450   :  { %v1290_v51 = vsel %vm623_vm14, %v1283_v31, %v1285_v29  ;;  %v1291_v57 = vsel %vm623_vm14, %v1285_v29, %v1287_v46  ;;  %v1396_v31 = vld [vmem:[#allocation13 + $0x78] sm:$0xff] }
 0x451   :  { %v1298_v55 = vmax.f32 %v1276_v40, %v1290_v51  ;;  %v1299_v8 = vmax.f32 %v1277_v58, %v1291_v57 }
 0x457   :  { %v1305_v54 = vpop.permute.xlu1 %1304 }
 0x458   :  { %v1311_v42 = vsel %vm557_vm13, %v1303_v28, %v1305_v54  ;;  %v1312_v47 = vsel %vm557_vm13, %v1305_v54, %v1307_v41 }
 0x459   :  { %v1319_v48 = vmax.f32 %v1297_v39, %v1311_v42  ;;  %v1320_v59 = vmax.f32 %v1298_v55, %v1312_v47 }
 0x45b   :  { %v1375_v53 = vmul.f32 %v1371_v44, %v1319_v48  ;;  %v1351_v56 = vmul.f32 %v1347_v45, %v1319_v48  ;;  %v1327_v61 = vmul.f32 %v1323_v50, %v1319_v48  ;;  %v1376_v15 = vmul.f32 %v1372_v62, %v1320_v59 }
 0x45c   :  { %v1352_v17 = vmul.f32 %v1348_v3, %v1320_v59  ;;  %v1328_v21 = vmul.f32 %v1324_v7, %v1320_v59  ;;  %v1398_v26 = vmul.f32 %v1394_v22, %v1319_v48  ;;  %v1399_v32 = vmul.f32 %v1395_v30, %v1320_v59 }
 0x45d   :  { %v1378_v5 = vadd.f32 %v1375_v53, %v1374_v2  ;;  %v1354_v6 = vadd.f32 %v1351_v56, %v1350_v60  ;;  %v1330_v12 = vadd.f32 %v1327_v61, %v1326_v4  ;;  %v1365_v2 = vld [vmem:[%s2052_s10] sm:$0x1] }
 0x45e   :  { %v1401_v34 = vadd.f32 %v1398_v26, %v1397_v10  ;;  %v1341_v60 = vld [vmem:[%s2052_s10] sm:$0x1] }
 0x45f   :  { %v1309_v11 = vpop.permute.xlu1 %1308  ;;  %v1379_v20 = vadd.f32 %v1378_v5, %v1376_v15  ;;  %v1355_v9 = vadd.f32 %v1354_v6, %v1352_v17  ;;  %v1331_v63 = vadd.f32 %v1330_v12, %v1328_v21 }
 0x460   :  { %v1313_v13 = vsel %vm557_vm13, %v1307_v41, %v1309_v11  ;;  %v1402_v33 = vadd.f32 %v1401_v34, %v1399_v32 }
 0x461   :  { %v1321_v19 = vmax.f32 %v1299_v8, %v1313_v13  ;;  %v1412_v8 = vld [vmem:[%s2052_s10] sm:$0x1] }
 0x463   :  { %v1377_v23 = vmul.f32 %v1373_v14, %v1321_v19  ;;  %v1353_v24 = vmul.f32 %v1349_v16, %v1321_v19  ;;  %v1329_v0 = vmul.f32 %v1325_v18, %v1321_v19  ;;  %v1400_v1 = vmul.f32 %v1396_v31, %v1321_v19 }
 0x465   :  { %v1380_v27 = vadd.f32 %v1379_v20, %v1377_v23  ;;  %v1356_v28 = vadd.f32 %v1355_v9, %v1353_v24  ;;  %v1332_v29 = vadd.f32 %v1331_v63, %v1329_v0  ;;  %v1403_v35 = vadd.f32 %v1402_v33, %v1400_v1 }
 0x467   :  { %1381 = vadd.xlane.f32.xlu0 %v1380_v27  ;;  %1357 = vadd.xlane.f32.xlu1 %v1356_v28 }
 0x468   :  { %1333 = vadd.xlane.f32.xlu2 %v1332_v29 }
 0x470   :  { %1404 = vadd.xlane.f32.xlu2 %v1403_v35 }
 0x4da   :  { %v1382_v37 = vpop.xlane.xlu0 %1381  ;;  %v1358_v51 = vpop.xlane.xlu1 %1357 }
 0x4db   :  { %v1383_v39 = vrot.slane %v1382_v37, 4  ;;  %v1359_v54 = vrot.slane %v1358_v51, 4  ;;  %v1334_v40 = vpop.xlane.xlu2 %1333 }
 0x4dc   :  { %v1335_v41 = vrot.slane %v1334_v40, 4 }
 0x4dd   :  { %v1384_v42 = vadd.f32 %v1383_v39, %v1382_v37  ;;  %v1360_v43 = vadd.f32 %v1359_v54, %v1358_v51 }
 0x4de   :  { %v1336_v38 = vadd.f32 %v1335_v41, %v1334_v40 }
 0x4df   :  { %v1385_v44 = vrot.slane %v1384_v42, 2  ;;  %v1361_v45 = vrot.slane %v1360_v43, 2 }
 0x4e0   :  { %v1337_v46 = vrot.slane %v1336_v38, 2 }
 0x4e1   :  { %v1386_v47 = vadd.f32 %v1385_v44, %v1384_v42  ;;  %v1362_v48 = vadd.f32 %v1361_v45, %v1360_v43 }
 0x4e2   :  { %v1338_v49 = vadd.f32 %v1337_v46, %v1336_v38 }
 0x4e3   :  { %v1387_v50 = vrot.slane %v1386_v47, 1  ;;  %v1363_v52 = vrot.slane %v1362_v48, 1  ;;  %v1405_v55 = vpop.xlane.xlu2 %1404 }
 0x4e4   :  { %v1339_v53 = vrot.slane %v1338_v49, 1  ;;  %v1406_v56 = vrot.slane %v1405_v55, 4 }
 0x4e5   :  { %v1388_v57 = vadd.f32 %v1387_v50, %v1386_v47  ;;  %v1364_v59 = vadd.f32 %v1363_v52, %v1362_v48 }
 0x4e6   :  { %v1340_v61 = vadd.f32 %v1339_v53, %v1338_v49  ;;  %v1407_v58 = vadd.f32 %v1406_v56, %v1405_v55 }
 0x4e7   :  { %v1390_v62 = vadd.f32 %v1389_v36, %v1388_v57  ;;  %v1366_v3 = vadd.f32 %v1365_v2, %v1364_v59 }
 0x4e8   :  { %v1342_v4 = vadd.f32 %v1341_v60, %v1340_v61  ;;  %v1408_v5 = vrot.slane %v1407_v58, 2 }
 0x4e9   :  { %1391 = vst.msk [vmem:[#allocation14 + $0x1] sm:$0x1] %vm1343_vm6, %v1390_v62 }
 0x4ea   :  { %v1409_v6 = vadd.f32 %v1408_v5, %v1407_v58  ;;  %1344 = vst.msk [vmem:[#allocation14] sm:$0x1] %vm1343_vm6, %v1342_v4 }
 0x4eb   :  { %1368 = vst.msk [vmem:[#allocation14] sm:$0x1] %vm1367_vm7, %v1366_v3 }
 0x4ec   :  { %v1410_v7 = vrot.slane %v1409_v6, 1 }
 0x4ee   :  { %v1411_v11 = vadd.f32 %v1410_v7, %v1409_v6 }
 0x4f0   :  { %v1413_v12 = vadd.f32 %v1412_v8, %v1411_v11 }
 0x4f2   :  { %1414 = vst.msk [vmem:[#allocation14 + $0x1] sm:$0x1] %vm1367_vm7, %v1413_v12 }
 0x4f3   :  { %1425 = dma.vmem_to_hbm [thread:$0]  %s1421_s21, 32, %s1423_s23, [#allocation10]  }
 0x4f4   :  { %1575 = dma.done.wait [#allocation10], 32  }
 0x4f5   :  { %1576 = vsyncadd [#allocation10], 4294967264 }
 0x4f6   :  { %1430 = vsyncpa [#allocation9], 1 }
 0x4f7   :  { %1431 = vsyncpa [#allocation12], 1 }
 0x4f8   :  { %1432 = vsyncpa [#allocation10], 1 }

</bundles_post_ra>
